<compile_context>
chip_gen: v6e
topology: v6e:2x2x1
jax: 0.10.0
libtpu: 0.0.40
codegen_flags: <defaults>
</compile_context>

<pallas_src>
import functools
import math

import jax
import jax.numpy as jnp
from jax.experimental import pallas as pl
from jax.experimental.pallas import tpu as pltpu


# ------------------------------ fused kernel --------------------------------

def _fused_forward_kernel(
    # activations / constants
    x_ref, pe_ref, mask_ref, last_sel_ref,
    # projection (bf16)
    proj_w_ref,
    # per-layer layernorm params  [L, 1, D]  (f32)
    ln1_g_ref, ln1_b_ref, ln2_g_ref, ln2_b_ref,
    # fused per-layer attention weights: wqkv [L, D, 3D] bf16, bqkv [L, 1, 3D] f32
    wqkv_ref, bqkv_ref,
    # output projection wo [L, D, D] bf16, bo [L, 1, D] f32
    wo_ref, bo_ref,
    # per-layer FFN: w1 [L, D, F] bf16, b1 [L, 1, F] f32, w2 [L, F, D] bf16, b2 [L, 1, D] f32
    w1_ref, b1_ref, w2_ref, b2_ref,
    # final layernorm [1, D] f32
    lnf_g_ref, lnf_b_ref,
    # decision net (w* bf16, b* f32; w2/b2 lane-padded)
    dec_w1_ref, dec_b1_ref, dec_w2_ref, dec_b2_ref,
    # output  [B, OUT_PAD]
    o_ref,
    *, num_layers, num_heads):
  f32 = jnp.float32
  bf16 = jnp.bfloat16
  D = proj_w_ref.shape[1]
  dh = D // num_heads
  scale = 1.0 / math.sqrt(dh)

  def layer_norm(v, g, b):
    mu = jnp.mean(v, axis=-1, keepdims=True)
    var = jnp.mean(jnp.square(v - mu), axis=-1, keepdims=True)
    return (v - mu) * jax.lax.rsqrt(var + 1e-5) * g + b

  def mm(a, w):
    # bf16 MXU matmul with f32 accumulation (weights are already bf16).
    return jnp.dot(a.astype(bf16), w, preferred_element_type=f32)

  # proj_l: Conv1d(dim_l, d_l, kernel_size=1, bias=False) == channel matmul.
  x = x_ref[...]                                                   # [M, Cin]
  h = mm(x, proj_w_ref[...]) * math.sqrt(D) + pe_ref[...]          # [M, D] f32

  mask = mask_ref[...]                                             # [M, M] f32 block-diag

  for l in range(num_layers):
    # --------------- self-attention block (pre-LN) ---------------
    a = layer_norm(h, ln1_g_ref[l], ln1_b_ref[l])                  # [M, D]
    qkv = mm(a, wqkv_ref[l]) + bqkv_ref[l]                         # [M, 3D] f32

    o_heads = []
    for hh in range(num_heads):
      q = qkv[:, hh * dh:(hh + 1) * dh].astype(bf16)               # [M, Dh]
      k = qkv[:, D + hh * dh:D + (hh + 1) * dh].astype(bf16)       # [M, Dh]
      v = qkv[:, 2 * D + hh * dh:2 * D + (hh + 1) * dh].astype(bf16)
      # scores = q @ k^T (contract last dims; no explicit transpose)
      s = jax.lax.dot_general(q, k, (((1,), (1,)), ((), ())),
                              preferred_element_type=f32) * scale + mask  # [M, M]
      s = s - jnp.max(s, axis=-1, keepdims=True)
      p = jnp.exp(s)
      p = p * pl.reciprocal(jnp.sum(p, axis=-1, keepdims=True), approx=True)
      o_heads.append(jnp.dot(p.astype(bf16), v, preferred_element_type=f32))  # [M, Dh]

    # merge heads (lane concat) + single output projection
    attn = mm(jnp.concatenate(o_heads, axis=-1), wo_ref[l]) + bo_ref[l]   # [M, D]
    h = h + attn

    # ------------------- FFN block (pre-LN) ----------------------
    f = layer_norm(h, ln2_g_ref[l], ln2_b_ref[l])
    f = jnp.maximum(mm(f, w1_ref[l]) + b1_ref[l], 0.0)
    h = h + mm(f, w2_ref[l]) + b2_ref[l]

  # final LN of the encoder
  h = layer_norm(h, lnf_g_ref[...], lnf_b_ref[...])                # [M, D]

  # enc_l(words)[-1] -> last sequence position per batch element, extracted
  # with a constant selection matmul (avoids unaligned row slices).
  last = jnp.dot(last_sel_ref[...], h, preferred_element_type=f32)  # [B, D]

  # DecisionNet: latent = relu(last @ W1 + b1); outputs_l = latent @ W2 + b2
  latent = jnp.maximum(mm(last, dec_w1_ref[...]) + dec_b1_ref[...], 0.0)
  out = mm(latent, dec_w2_ref[...]) + dec_b2_ref[...]              # [B, OUT_PAD]
  o_ref[...] = out.astype(o_ref.dtype)


# ------------------------------ host-side glue -------------------------------

def sinusoidal_positions(S, D):
  pos = jnp.arange(S, dtype=jnp.float32)[:, None]
  i = jnp.arange(D // 2, dtype=jnp.float32)[None, :]
  angle = pos / jnp.power(10000.0, 2.0 * i / D)
  return jnp.concatenate([jnp.sin(angle), jnp.cos(angle)], axis=-1)   # [S, D]


def pack_params(params, num_heads):
  """Reshape / fuse natural-layout weights into the kernel layout (once)."""
  del num_heads  # head split is done with lane slices inside the kernel
  f32, bf16 = jnp.float32, jnp.bfloat16
  enc = params["enc_l"]
  layers = enc["layers"]
  D = params["proj_l_w"].shape[1]
  F = layers[0]["w1"].shape[1]

  wqkv, bqkv, wo, bo = [], [], [], []
  ln1_g, ln1_b, ln2_g, ln2_b = [], [], [], []
  w1, b1, w2, b2 = [], [], [], []
  for lp in layers:
    wqkv.append(jnp.concatenate([lp["wq"], lp["wk"], lp["wv"]], axis=1))   # [D, 3D]
    bqkv.append(jnp.concatenate([lp["bq"], lp["bk"], lp["bv"]]).reshape(1, 3 * D))
    wo.append(lp["wo"])                                                    # [D, D]
    bo.append(lp["bo"].reshape(1, D))
    ln1_g.append(lp["ln1_g"].reshape(1, D)); ln1_b.append(lp["ln1_b"].reshape(1, D))
    ln2_g.append(lp["ln2_g"].reshape(1, D)); ln2_b.append(lp["ln2_b"].reshape(1, D))
    w1.append(lp["w1"]); b1.append(lp["b1"].reshape(1, F))
    w2.append(lp["w2"]); b2.append(lp["b2"].reshape(1, D))

  out_dim = params["dec_l"]["w2"].shape[1]
  out_pad = max(128, ((out_dim + 127) // 128) * 128)   # lane-dense output store
  dec_w2 = jnp.zeros((D, out_pad), f32).at[:, :out_dim].set(params["dec_l"]["w2"])
  dec_b2 = jnp.zeros((1, out_pad), f32).at[:, :out_dim].set(
      params["dec_l"]["b2"].reshape(1, -1))

  return {
      "proj_w": params["proj_l_w"].astype(bf16),
      "ln1_g": jnp.stack(ln1_g), "ln1_b": jnp.stack(ln1_b),
      "ln2_g": jnp.stack(ln2_g), "ln2_b": jnp.stack(ln2_b),
      "wqkv": jnp.stack(wqkv).astype(bf16),       # [L, D, 3D]
      "bqkv": jnp.stack(bqkv),                    # [L, 1, 3D]
      "wo": jnp.stack(wo).astype(bf16),           # [L, D, D]
      "bo": jnp.stack(bo),                        # [L, 1, D]
      "w1": jnp.stack(w1).astype(bf16), "b1": jnp.stack(b1),
      "w2": jnp.stack(w2).astype(bf16), "b2": jnp.stack(b2),
      "lnf_g": enc["lnf_g"].reshape(1, D), "lnf_b": enc["lnf_b"].reshape(1, D),
      "dec_w1": params["dec_l"]["w1"].astype(bf16),
      "dec_b1": params["dec_l"]["b1"].reshape(1, -1),
      "dec_w2": dec_w2.astype(bf16),              # [D, OUT_PAD]
      "dec_b2": dec_b2,                           # [1, OUT_PAD]
  }


def model_forward(packed, x_l, *, num_heads, num_layers, out_dim):
  """L_MODE forward: returns outputs_l of shape [B, output_dim]."""
  B, S, Cin = x_l.shape
  D = packed["proj_w"].shape[1]
  F = packed["w1"].shape[2]
  out_pad = packed["dec_w2"].shape[1]
  M = B * S

  # F.dropout(x_l.transpose(1, 2), p=0.25) is identity in eval mode.
  x_flat = x_l.reshape(M, Cin).astype(jnp.float32)
  pe = jnp.tile(sinusoidal_positions(S, D), (B, 1))                   # [M, D]
  # Block-diagonal additive mask so flattened batches cannot attend across.
  bid = jnp.arange(M, dtype=jnp.int32) // S
  mask = jnp.where(bid[:, None] == bid[None, :], 0.0, -1e9).astype(jnp.float32)
  # Selection matrix picking the last sequence position of each batch element.
  last_sel = jax.nn.one_hot(jnp.arange(B) * S + (S - 1), M, dtype=jnp.float32)

  args = (x_flat, pe, mask, last_sel, packed["proj_w"],
          packed["ln1_g"], packed["ln1_b"], packed["ln2_g"], packed["ln2_b"],
          packed["wqkv"], packed["bqkv"], packed["wo"], packed["bo"],
          packed["w1"], packed["b1"], packed["w2"], packed["b2"],
          packed["lnf_g"], packed["lnf_b"],
          packed["dec_w1"], packed["dec_b1"], packed["dec_w2"], packed["dec_b2"])

  # Rough cost estimate for XLA scheduling around the fused custom call.
  flops = 2 * M * Cin * D
  flops += num_layers * (2 * M * D * (3 * D)      # fused QKV
                         + 4 * M * M * D          # scores + P@V (all heads)
                         + 2 * M * D * D          # output projection
                         + 4 * M * D * F)         # FFN
  flops += 2 * B * M * D + 2 * B * D * D + 2 * B * D * out_pad
  transcendentals = num_layers * (num_heads * M * M + num_heads * M + 2 * M) + M
  bytes_accessed = sum(int(a.size) * a.dtype.itemsize for a in args) + B * out_pad * 4

  vmem_spec = pl.BlockSpec(memory_space=pltpu.MemorySpace.VMEM)
  kernel = functools.partial(_fused_forward_kernel,
                             num_layers=num_layers, num_heads=num_heads)
  out = pl.pallas_call(
      kernel,
      out_shape=jax.ShapeDtypeStruct((B, out_pad), jnp.float32),
      in_specs=[vmem_spec] * len(args),
      out_specs=vmem_spec,
      cost_estimate=pl.CostEstimate(flops=int(flops),
                                    transcendentals=int(transcendentals),
                                    bytes_accessed=int(bytes_accessed)),
  )(*args)
  return out[:, :out_dim]


# --------------------------- deterministic init ------------------------------

def init_params(key, dim_l, d_l, n_layers, ffn_dim, output_dim):
  def nrm(k, shape, scale=0.05):
    return scale * jax.random.normal(k, shape, dtype=jnp.float32)

  keys = iter(jax.random.split(key, 16 + 12 * n_layers))
  params = {"proj_l_w": nrm(next(keys), (dim_l, d_l))}

  layers = []
  for _ in range(n_layers):
    layers.append({
        "ln1_g": jnp.ones((d_l,), jnp.float32),
        "ln1_b": jnp.zeros((d_l,), jnp.float32),
        "wq": nrm(next(keys), (d_l, d_l)), "bq": jnp.zeros((d_l,), jnp.float32),
        "wk": nrm(next(keys), (d_l, d_l)), "bk": jnp.zeros((d_l,), jnp.float32),
        "wv": nrm(next(keys), (d_l, d_l)), "bv": jnp.zeros((d_l,), jnp.float32),
        "wo": nrm(next(keys), (d_l, d_l)), "bo": jnp.zeros((d_l,), jnp.float32),
        "ln2_g": jnp.ones((d_l,), jnp.float32),
        "ln2_b": jnp.zeros((d_l,), jnp.float32),
        "w1": nrm(next(keys), (d_l, ffn_dim)),
        "b1": jnp.zeros((ffn_dim,), jnp.float32),
        "w2": nrm(next(keys), (ffn_dim, d_l)),
        "b2": jnp.zeros((d_l,), jnp.float32),
    })
  params["enc_l"] = {
      "layers": layers,
      "lnf_g": jnp.ones((d_l,), jnp.float32),
      "lnf_b": jnp.zeros((d_l,), jnp.float32),
  }
  params["dec_l"] = {
      "w1": nrm(next(keys), (d_l, d_l)),
      "b1": jnp.zeros((d_l,), jnp.float32),
      "w2": nrm(next(keys), (d_l, output_dim)),
      "b2": jnp.zeros((output_dim,), jnp.float32),
  }
  return params


if __name__ == "__main__":
  # Small shapes consistent with the module: x_l is [batch, seq, dim_l].
  B, S = 2, 8
  dim_l = 20          # ds.dim_l
  d_l = 32            # projected text dim
  n_head_l = 4        # d_l % n_head_l == 0
  n_layers_l = 2
  output_dim = 1      # ds.output_dim
  ffn_dim = 4 * d_l

  key = jax.random.PRNGKey(0)
  k_params, k_x = jax.random.split(key)
  params = init_params(k_params, dim_l, d_l, n_layers_l, ffn_dim, output_dim)
  packed = pack_params(params, n_head_l)
  x_l = jax.random.normal(k_x, (B, S, dim_l), dtype=jnp.float32)

  fwd = jax.jit(functools.partial(model_forward, num_heads=n_head_l,
                                  num_layers=n_layers_l, out_dim=output_dim))
  out = fwd(packed, x_l)
  jax.block_until_ready(out)
  assert out.shape == (B, output_dim)
  assert bool(jnp.all(jnp.isfinite(out)))
  print("KERNEL_OK")
</pallas_src>

<mosaic_0001>
module attributes {stable_mosaic.version = 11 : i64} {
  func.func @_fused_forward_kernel(%arg0: memref<16x20xf32, #tpu.memory_space<vmem>>, %arg1: memref<16x32xf32, #tpu.memory_space<vmem>>, %arg2: memref<16x16xf32, #tpu.memory_space<vmem>>, %arg3: memref<2x16xf32, #tpu.memory_space<vmem>>, %arg4: memref<20x32xbf16, #tpu.memory_space<vmem>>, %arg5: memref<2x1x32xf32, #tpu.memory_space<vmem>>, %arg6: memref<2x1x32xf32, #tpu.memory_space<vmem>>, %arg7: memref<2x1x32xf32, #tpu.memory_space<vmem>>, %arg8: memref<2x1x32xf32, #tpu.memory_space<vmem>>, %arg9: memref<2x32x96xbf16, #tpu.memory_space<vmem>>, %arg10: memref<2x1x96xf32, #tpu.memory_space<vmem>>, %arg11: memref<2x32x32xbf16, #tpu.memory_space<vmem>>, %arg12: memref<2x1x32xf32, #tpu.memory_space<vmem>>, %arg13: memref<2x32x128xbf16, #tpu.memory_space<vmem>>, %arg14: memref<2x1x128xf32, #tpu.memory_space<vmem>>, %arg15: memref<2x128x32xbf16, #tpu.memory_space<vmem>>, %arg16: memref<2x1x32xf32, #tpu.memory_space<vmem>>, %arg17: memref<1x32xf32, #tpu.memory_space<vmem>>, %arg18: memref<1x32xf32, #tpu.memory_space<vmem>>, %arg19: memref<32x32xbf16, #tpu.memory_space<vmem>>, %arg20: memref<1x32xf32, #tpu.memory_space<vmem>>, %arg21: memref<32x128xbf16, #tpu.memory_space<vmem>>, %arg22: memref<1x128xf32, #tpu.memory_space<vmem>>, %arg23: memref<2x128xf32, #tpu.memory_space<vmem>>) attributes {dimension_semantics = [], scalar_prefetch = 0 : i64, scratch_operands = 0 : i64, tpu.core_type = #tpu.core_type<tc>} {
    %c0 = arith.constant 0 : index
    %c0_0 = arith.constant 0 : index
    %0 = vector.load %arg0[%c0, %c0_0] : memref<16x20xf32, #tpu.memory_space<vmem>>, vector<16x20xf32>
    %c0_1 = arith.constant 0 : index
    %c0_2 = arith.constant 0 : index
    %1 = vector.load %arg4[%c0_1, %c0_2] : memref<20x32xbf16, #tpu.memory_space<vmem>>, vector<20x32xbf16>
    %2 = arith.truncf %0 : vector<16x20xf32> to vector<16x20xbf16>
    %cst = arith.constant dense<0.000000e+00> : vector<16x32xf32>
    %3 = tpu.matmul %2, %1, %cst {dimension_numbers = #tpu.dot_dimension_numbers<[1], [0], [0], [1], [0, 0, 1, 1], [], []>} : vector<16x20xbf16>, vector<20x32xbf16>, vector<16x32xf32> -> vector<16x32xf32>
    %cst_3 = arith.constant 5.65685415 : f32
    %4 = vector.broadcast %cst_3 : f32 to vector<16x32xf32>
    %5 = arith.mulf %3, %4 : vector<16x32xf32>
    %c0_4 = arith.constant 0 : index
    %c0_5 = arith.constant 0 : index
    %6 = vector.load %arg1[%c0_4, %c0_5] : memref<16x32xf32, #tpu.memory_space<vmem>>, vector<16x32xf32>
    %7 = arith.addf %5, %6 : vector<16x32xf32>
    %c0_6 = arith.constant 0 : index
    %c0_7 = arith.constant 0 : index
    %8 = vector.load %arg2[%c0_6, %c0_7] : memref<16x16xf32, #tpu.memory_space<vmem>>, vector<16x16xf32>
    %c0_8 = arith.constant 0 : index
    %c0_9 = arith.constant 0 : index
    %c0_10 = arith.constant 0 : index
    %9 = vector.load %arg5[%c0_8, %c0_9, %c0_10] : memref<2x1x32xf32, #tpu.memory_space<vmem>>, vector<1x1x32xf32>
    %10 = vector.shape_cast %9 : vector<1x1x32xf32> to vector<1x32xf32>
    %c0_11 = arith.constant 0 : index
    %c0_12 = arith.constant 0 : index
    %c0_13 = arith.constant 0 : index
    %11 = vector.load %arg6[%c0_11, %c0_12, %c0_13] : memref<2x1x32xf32, #tpu.memory_space<vmem>>, vector<1x1x32xf32>
    %12 = vector.shape_cast %11 : vector<1x1x32xf32> to vector<1x32xf32>
    %cst_14 = arith.constant dense<0.000000e+00> : vector<16xf32>
    %13 = vector.multi_reduction <add>, %7, %cst_14 [1] : vector<16x32xf32> to vector<16xf32>
    %14 = vector.shape_cast %13 : vector<16xf32> to vector<16x1xf32>
    %cst_15 = arith.constant 3.200000e+01 : f32
    %15 = vector.broadcast %cst_15 : f32 to vector<16x1xf32>
    %16 = arith.divf %14, %15 : vector<16x1xf32>
    %17 = vector.broadcast %16 : vector<16x1xf32> to vector<16x32xf32>
    %18 = arith.subf %7, %17 : vector<16x32xf32>
    %19 = arith.mulf %18, %18 : vector<16x32xf32>
    %cst_16 = arith.constant dense<0.000000e+00> : vector<16xf32>
    %20 = vector.multi_reduction <add>, %19, %cst_16 [1] : vector<16x32xf32> to vector<16xf32>
    %21 = vector.shape_cast %20 : vector<16xf32> to vector<16x1xf32>
    %cst_17 = arith.constant 3.200000e+01 : f32
    %22 = vector.broadcast %cst_17 : f32 to vector<16x1xf32>
    %23 = arith.divf %21, %22 : vector<16x1xf32>
    %24 = vector.broadcast %16 : vector<16x1xf32> to vector<16x32xf32>
    %25 = arith.subf %7, %24 : vector<16x32xf32>
    %cst_18 = arith.constant 9.99999974E-6 : f32
    %26 = vector.broadcast %cst_18 : f32 to vector<16x1xf32>
    %27 = arith.addf %23, %26 : vector<16x1xf32>
    %28 = math.rsqrt %27 : vector<16x1xf32>
    %29 = vector.broadcast %28 : vector<16x1xf32> to vector<16x32xf32>
    %30 = arith.mulf %25, %29 : vector<16x32xf32>
    %31 = vector.broadcast %10 : vector<1x32xf32> to vector<16x32xf32>
    %32 = arith.mulf %30, %31 : vector<16x32xf32>
    %33 = vector.broadcast %12 : vector<1x32xf32> to vector<16x32xf32>
    %34 = arith.addf %32, %33 : vector<16x32xf32>
    %c0_19 = arith.constant 0 : index
    %c0_20 = arith.constant 0 : index
    %c0_21 = arith.constant 0 : index
    %35 = vector.load %arg9[%c0_19, %c0_20, %c0_21] : memref<2x32x96xbf16, #tpu.memory_space<vmem>>, vector<1x32x96xbf16>
    %36 = vector.shape_cast %35 : vector<1x32x96xbf16> to vector<32x96xbf16>
    %37 = arith.truncf %34 : vector<16x32xf32> to vector<16x32xbf16>
    %cst_22 = arith.constant dense<0.000000e+00> : vector<16x96xf32>
    %38 = tpu.matmul %37, %36, %cst_22 {dimension_numbers = #tpu.dot_dimension_numbers<[1], [0], [0], [1], [0, 0, 1, 1], [], []>} : vector<16x32xbf16>, vector<32x96xbf16>, vector<16x96xf32> -> vector<16x96xf32>
    %c0_23 = arith.constant 0 : index
    %c0_24 = arith.constant 0 : index
    %c0_25 = arith.constant 0 : index
    %39 = vector.load %arg10[%c0_23, %c0_24, %c0_25] : memref<2x1x96xf32, #tpu.memory_space<vmem>>, vector<1x1x96xf32>
    %40 = vector.shape_cast %39 : vector<1x1x96xf32> to vector<1x96xf32>
    %41 = vector.broadcast %40 : vector<1x96xf32> to vector<16x96xf32>
    %42 = arith.addf %38, %41 : vector<16x96xf32>
    %43 = vector.extract_strided_slice %42 {offsets = [0, 0], sizes = [16, 8], strides = [1, 1]} : vector<16x96xf32> to vector<16x8xf32>
    %44 = arith.truncf %43 : vector<16x8xf32> to vector<16x8xbf16>
    %45 = vector.extract_strided_slice %42 {offsets = [0, 32], sizes = [16, 8], strides = [1, 1]} : vector<16x96xf32> to vector<16x8xf32>
    %46 = arith.truncf %45 : vector<16x8xf32> to vector<16x8xbf16>
    %47 = vector.extract_strided_slice %42 {offsets = [0, 64], sizes = [16, 8], strides = [1, 1]} : vector<16x96xf32> to vector<16x8xf32>
    %48 = arith.truncf %47 : vector<16x8xf32> to vector<16x8xbf16>
    %cst_26 = arith.constant dense<0.000000e+00> : vector<16x16xf32>
    %49 = tpu.matmul %44, %46, %cst_26 {dimension_numbers = #tpu.dot_dimension_numbers<[1], [1], [0], [0], [0, 0, 1, 0], [], []>} : vector<16x8xbf16>, vector<16x8xbf16>, vector<16x16xf32> -> vector<16x16xf32>
    %cst_27 = arith.constant 0.353553385 : f32
    %50 = vector.broadcast %cst_27 : f32 to vector<16x16xf32>
    %51 = arith.mulf %49, %50 : vector<16x16xf32>
    %52 = arith.addf %51, %8 : vector<16x16xf32>
    %cst_28 = arith.constant dense<0xFF800000> : vector<16xf32>
    %53 = vector.multi_reduction <maximumf>, %52, %cst_28 [1] : vector<16x16xf32> to vector<16xf32>
    %54 = vector.shape_cast %53 : vector<16xf32> to vector<16x1xf32>
    %55 = vector.broadcast %54 : vector<16x1xf32> to vector<16x16xf32>
    %56 = arith.subf %52, %55 : vector<16x16xf32>
    %57 = math.exp %56 : vector<16x16xf32>
    %cst_29 = arith.constant dense<0.000000e+00> : vector<16xf32>
    %58 = vector.multi_reduction <add>, %57, %cst_29 [1] : vector<16x16xf32> to vector<16xf32>
    %59 = vector.shape_cast %58 : vector<16xf32> to vector<16x1xf32>
    %60 = tpu.reciprocal %59 {approx = true} : vector<16x1xf32> -> vector<16x1xf32>
    %61 = vector.broadcast %60 : vector<16x1xf32> to vector<16x16xf32>
    %62 = arith.mulf %57, %61 : vector<16x16xf32>
    %63 = arith.truncf %62 : vector<16x16xf32> to vector<16x16xbf16>
    %cst_30 = arith.constant dense<0.000000e+00> : vector<16x8xf32>
    %64 = tpu.matmul %63, %48, %cst_30 {dimension_numbers = #tpu.dot_dimension_numbers<[1], [0], [0], [1], [0, 0, 1, 1], [], []>} : vector<16x16xbf16>, vector<16x8xbf16>, vector<16x8xf32> -> vector<16x8xf32>
    %65 = vector.extract_strided_slice %42 {offsets = [0, 8], sizes = [16, 8], strides = [1, 1]} : vector<16x96xf32> to vector<16x8xf32>
    %66 = arith.truncf %65 : vector<16x8xf32> to vector<16x8xbf16>
    %67 = vector.extract_strided_slice %42 {offsets = [0, 40], sizes = [16, 8], strides = [1, 1]} : vector<16x96xf32> to vector<16x8xf32>
    %68 = arith.truncf %67 : vector<16x8xf32> to vector<16x8xbf16>
    %69 = vector.extract_strided_slice %42 {offsets = [0, 72], sizes = [16, 8], strides = [1, 1]} : vector<16x96xf32> to vector<16x8xf32>
    %70 = arith.truncf %69 : vector<16x8xf32> to vector<16x8xbf16>
    %cst_31 = arith.constant dense<0.000000e+00> : vector<16x16xf32>
    %71 = tpu.matmul %66, %68, %cst_31 {dimension_numbers = #tpu.dot_dimension_numbers<[1], [1], [0], [0], [0, 0, 1, 0], [], []>} : vector<16x8xbf16>, vector<16x8xbf16>, vector<16x16xf32> -> vector<16x16xf32>
    %cst_32 = arith.constant 0.353553385 : f32
    %72 = vector.broadcast %cst_32 : f32 to vector<16x16xf32>
    %73 = arith.mulf %71, %72 : vector<16x16xf32>
    %74 = arith.addf %73, %8 : vector<16x16xf32>
    %cst_33 = arith.constant dense<0xFF800000> : vector<16xf32>
    %75 = vector.multi_reduction <maximumf>, %74, %cst_33 [1] : vector<16x16xf32> to vector<16xf32>
    %76 = vector.shape_cast %75 : vector<16xf32> to vector<16x1xf32>
    %77 = vector.broadcast %76 : vector<16x1xf32> to vector<16x16xf32>
    %78 = arith.subf %74, %77 : vector<16x16xf32>
    %79 = math.exp %78 : vector<16x16xf32>
    %cst_34 = arith.constant dense<0.000000e+00> : vector<16xf32>
    %80 = vector.multi_reduction <add>, %79, %cst_34 [1] : vector<16x16xf32> to vector<16xf32>
    %81 = vector.shape_cast %80 : vector<16xf32> to vector<16x1xf32>
    %82 = tpu.reciprocal %81 {approx = true} : vector<16x1xf32> -> vector<16x1xf32>
    %83 = vector.broadcast %82 : vector<16x1xf32> to vector<16x16xf32>
    %84 = arith.mulf %79, %83 : vector<16x16xf32>
    %85 = arith.truncf %84 : vector<16x16xf32> to vector<16x16xbf16>
    %cst_35 = arith.constant dense<0.000000e+00> : vector<16x8xf32>
    %86 = tpu.matmul %85, %70, %cst_35 {dimension_numbers = #tpu.dot_dimension_numbers<[1], [0], [0], [1], [0, 0, 1, 1], [], []>} : vector<16x16xbf16>, vector<16x8xbf16>, vector<16x8xf32> -> vector<16x8xf32>
    %87 = vector.extract_strided_slice %42 {offsets = [0, 16], sizes = [16, 8], strides = [1, 1]} : vector<16x96xf32> to vector<16x8xf32>
    %88 = arith.truncf %87 : vector<16x8xf32> to vector<16x8xbf16>
    %89 = vector.extract_strided_slice %42 {offsets = [0, 48], sizes = [16, 8], strides = [1, 1]} : vector<16x96xf32> to vector<16x8xf32>
    %90 = arith.truncf %89 : vector<16x8xf32> to vector<16x8xbf16>
    %91 = vector.extract_strided_slice %42 {offsets = [0, 80], sizes = [16, 8], strides = [1, 1]} : vector<16x96xf32> to vector<16x8xf32>
    %92 = arith.truncf %91 : vector<16x8xf32> to vector<16x8xbf16>
    %cst_36 = arith.constant dense<0.000000e+00> : vector<16x16xf32>
    %93 = tpu.matmul %88, %90, %cst_36 {dimension_numbers = #tpu.dot_dimension_numbers<[1], [1], [0], [0], [0, 0, 1, 0], [], []>} : vector<16x8xbf16>, vector<16x8xbf16>, vector<16x16xf32> -> vector<16x16xf32>
    %cst_37 = arith.constant 0.353553385 : f32
    %94 = vector.broadcast %cst_37 : f32 to vector<16x16xf32>
    %95 = arith.mulf %93, %94 : vector<16x16xf32>
    %96 = arith.addf %95, %8 : vector<16x16xf32>
    %cst_38 = arith.constant dense<0xFF800000> : vector<16xf32>
    %97 = vector.multi_reduction <maximumf>, %96, %cst_38 [1] : vector<16x16xf32> to vector<16xf32>
    %98 = vector.shape_cast %97 : vector<16xf32> to vector<16x1xf32>
    %99 = vector.broadcast %98 : vector<16x1xf32> to vector<16x16xf32>
    %100 = arith.subf %96, %99 : vector<16x16xf32>
    %101 = math.exp %100 : vector<16x16xf32>
    %cst_39 = arith.constant dense<0.000000e+00> : vector<16xf32>
    %102 = vector.multi_reduction <add>, %101, %cst_39 [1] : vector<16x16xf32> to vector<16xf32>
    %103 = vector.shape_cast %102 : vector<16xf32> to vector<16x1xf32>
    %104 = tpu.reciprocal %103 {approx = true} : vector<16x1xf32> -> vector<16x1xf32>
    %105 = vector.broadcast %104 : vector<16x1xf32> to vector<16x16xf32>
    %106 = arith.mulf %101, %105 : vector<16x16xf32>
    %107 = arith.truncf %106 : vector<16x16xf32> to vector<16x16xbf16>
    %cst_40 = arith.constant dense<0.000000e+00> : vector<16x8xf32>
    %108 = tpu.matmul %107, %92, %cst_40 {dimension_numbers = #tpu.dot_dimension_numbers<[1], [0], [0], [1], [0, 0, 1, 1], [], []>} : vector<16x16xbf16>, vector<16x8xbf16>, vector<16x8xf32> -> vector<16x8xf32>
    %109 = vector.extract_strided_slice %42 {offsets = [0, 24], sizes = [16, 8], strides = [1, 1]} : vector<16x96xf32> to vector<16x8xf32>
    %110 = arith.truncf %109 : vector<16x8xf32> to vector<16x8xbf16>
    %111 = vector.extract_strided_slice %42 {offsets = [0, 56], sizes = [16, 8], strides = [1, 1]} : vector<16x96xf32> to vector<16x8xf32>
    %112 = arith.truncf %111 : vector<16x8xf32> to vector<16x8xbf16>
    %113 = vector.extract_strided_slice %42 {offsets = [0, 88], sizes = [16, 8], strides = [1, 1]} : vector<16x96xf32> to vector<16x8xf32>
    %114 = arith.truncf %113 : vector<16x8xf32> to vector<16x8xbf16>
    %cst_41 = arith.constant dense<0.000000e+00> : vector<16x16xf32>
    %115 = tpu.matmul %110, %112, %cst_41 {dimension_numbers = #tpu.dot_dimension_numbers<[1], [1], [0], [0], [0, 0, 1, 0], [], []>} : vector<16x8xbf16>, vector<16x8xbf16>, vector<16x16xf32> -> vector<16x16xf32>
    %cst_42 = arith.constant 0.353553385 : f32
    %116 = vector.broadcast %cst_42 : f32 to vector<16x16xf32>
    %117 = arith.mulf %115, %116 : vector<16x16xf32>
    %118 = arith.addf %117, %8 : vector<16x16xf32>
    %cst_43 = arith.constant dense<0xFF800000> : vector<16xf32>
    %119 = vector.multi_reduction <maximumf>, %118, %cst_43 [1] : vector<16x16xf32> to vector<16xf32>
    %120 = vector.shape_cast %119 : vector<16xf32> to vector<16x1xf32>
    %121 = vector.broadcast %120 : vector<16x1xf32> to vector<16x16xf32>
    %122 = arith.subf %118, %121 : vector<16x16xf32>
    %123 = math.exp %122 : vector<16x16xf32>
    %cst_44 = arith.constant dense<0.000000e+00> : vector<16xf32>
    %124 = vector.multi_reduction <add>, %123, %cst_44 [1] : vector<16x16xf32> to vector<16xf32>
    %125 = vector.shape_cast %124 : vector<16xf32> to vector<16x1xf32>
    %126 = tpu.reciprocal %125 {approx = true} : vector<16x1xf32> -> vector<16x1xf32>
    %127 = vector.broadcast %126 : vector<16x1xf32> to vector<16x16xf32>
    %128 = arith.mulf %123, %127 : vector<16x16xf32>
    %129 = arith.truncf %128 : vector<16x16xf32> to vector<16x16xbf16>
    %cst_45 = arith.constant dense<0.000000e+00> : vector<16x8xf32>
    %130 = tpu.matmul %129, %114, %cst_45 {dimension_numbers = #tpu.dot_dimension_numbers<[1], [0], [0], [1], [0, 0, 1, 1], [], []>} : vector<16x16xbf16>, vector<16x8xbf16>, vector<16x8xf32> -> vector<16x8xf32>
    %131 = tpu.concatenate %64, %86, %108, %130 in 1 : vector<16x8xf32>, vector<16x8xf32>, vector<16x8xf32>, vector<16x8xf32> -> vector<16x32xf32>
    %c0_46 = arith.constant 0 : index
    %c0_47 = arith.constant 0 : index
    %c0_48 = arith.constant 0 : index
    %132 = vector.load %arg11[%c0_46, %c0_47, %c0_48] : memref<2x32x32xbf16, #tpu.memory_space<vmem>>, vector<1x32x32xbf16>
    %133 = vector.shape_cast %132 : vector<1x32x32xbf16> to vector<32x32xbf16>
    %134 = arith.truncf %131 : vector<16x32xf32> to vector<16x32xbf16>
    %cst_49 = arith.constant dense<0.000000e+00> : vector<16x32xf32>
    %135 = tpu.matmul %134, %133, %cst_49 {dimension_numbers = #tpu.dot_dimension_numbers<[1], [0], [0], [1], [0, 0, 1, 1], [], []>} : vector<16x32xbf16>, vector<32x32xbf16>, vector<16x32xf32> -> vector<16x32xf32>
    %c0_50 = arith.constant 0 : index
    %c0_51 = arith.constant 0 : index
    %c0_52 = arith.constant 0 : index
    %136 = vector.load %arg12[%c0_50, %c0_51, %c0_52] : memref<2x1x32xf32, #tpu.memory_space<vmem>>, vector<1x1x32xf32>
    %137 = vector.shape_cast %136 : vector<1x1x32xf32> to vector<1x32xf32>
    %138 = vector.broadcast %137 : vector<1x32xf32> to vector<16x32xf32>
    %139 = arith.addf %135, %138 : vector<16x32xf32>
    %140 = arith.addf %7, %139 : vector<16x32xf32>
    %c0_53 = arith.constant 0 : index
    %c0_54 = arith.constant 0 : index
    %c0_55 = arith.constant 0 : index
    %141 = vector.load %arg7[%c0_53, %c0_54, %c0_55] : memref<2x1x32xf32, #tpu.memory_space<vmem>>, vector<1x1x32xf32>
    %142 = vector.shape_cast %141 : vector<1x1x32xf32> to vector<1x32xf32>
    %c0_56 = arith.constant 0 : index
    %c0_57 = arith.constant 0 : index
    %c0_58 = arith.constant 0 : index
    %143 = vector.load %arg8[%c0_56, %c0_57, %c0_58] : memref<2x1x32xf32, #tpu.memory_space<vmem>>, vector<1x1x32xf32>
    %144 = vector.shape_cast %143 : vector<1x1x32xf32> to vector<1x32xf32>
    %cst_59 = arith.constant dense<0.000000e+00> : vector<16xf32>
    %145 = vector.multi_reduction <add>, %140, %cst_59 [1] : vector<16x32xf32> to vector<16xf32>
    %146 = vector.shape_cast %145 : vector<16xf32> to vector<16x1xf32>
    %cst_60 = arith.constant 3.200000e+01 : f32
    %147 = vector.broadcast %cst_60 : f32 to vector<16x1xf32>
    %148 = arith.divf %146, %147 : vector<16x1xf32>
    %149 = vector.broadcast %148 : vector<16x1xf32> to vector<16x32xf32>
    %150 = arith.subf %140, %149 : vector<16x32xf32>
    %151 = arith.mulf %150, %150 : vector<16x32xf32>
    %cst_61 = arith.constant dense<0.000000e+00> : vector<16xf32>
    %152 = vector.multi_reduction <add>, %151, %cst_61 [1] : vector<16x32xf32> to vector<16xf32>
    %153 = vector.shape_cast %152 : vector<16xf32> to vector<16x1xf32>
    %cst_62 = arith.constant 3.200000e+01 : f32
    %154 = vector.broadcast %cst_62 : f32 to vector<16x1xf32>
    %155 = arith.divf %153, %154 : vector<16x1xf32>
    %156 = vector.broadcast %148 : vector<16x1xf32> to vector<16x32xf32>
    %157 = arith.subf %140, %156 : vector<16x32xf32>
    %cst_63 = arith.constant 9.99999974E-6 : f32
    %158 = vector.broadcast %cst_63 : f32 to vector<16x1xf32>
    %159 = arith.addf %155, %158 : vector<16x1xf32>
    %160 = math.rsqrt %159 : vector<16x1xf32>
    %161 = vector.broadcast %160 : vector<16x1xf32> to vector<16x32xf32>
    %162 = arith.mulf %157, %161 : vector<16x32xf32>
    %163 = vector.broadcast %142 : vector<1x32xf32> to vector<16x32xf32>
    %164 = arith.mulf %162, %163 : vector<16x32xf32>
    %165 = vector.broadcast %144 : vector<1x32xf32> to vector<16x32xf32>
    %166 = arith.addf %164, %165 : vector<16x32xf32>
    %c0_64 = arith.constant 0 : index
    %c0_65 = arith.constant 0 : index
    %c0_66 = arith.constant 0 : index
    %167 = vector.load %arg13[%c0_64, %c0_65, %c0_66] : memref<2x32x128xbf16, #tpu.memory_space<vmem>>, vector<1x32x128xbf16>
    %168 = vector.shape_cast %167 : vector<1x32x128xbf16> to vector<32x128xbf16>
    %169 = arith.truncf %166 : vector<16x32xf32> to vector<16x32xbf16>
    %cst_67 = arith.constant dense<0.000000e+00> : vector<16x128xf32>
    %170 = tpu.matmul %169, %168, %cst_67 {dimension_numbers = #tpu.dot_dimension_numbers<[1], [0], [0], [1], [0, 0, 1, 1], [], []>} : vector<16x32xbf16>, vector<32x128xbf16>, vector<16x128xf32> -> vector<16x128xf32>
    %c0_68 = arith.constant 0 : index
    %c0_69 = arith.constant 0 : index
    %c0_70 = arith.constant 0 : index
    %171 = vector.load %arg14[%c0_68, %c0_69, %c0_70] : memref<2x1x128xf32, #tpu.memory_space<vmem>>, vector<1x1x128xf32>
    %172 = vector.shape_cast %171 : vector<1x1x128xf32> to vector<1x128xf32>
    %173 = vector.broadcast %172 : vector<1x128xf32> to vector<16x128xf32>
    %174 = arith.addf %170, %173 : vector<16x128xf32>
    %cst_71 = arith.constant 0.000000e+00 : f32
    %175 = vector.broadcast %cst_71 : f32 to vector<16x128xf32>
    %176 = arith.maximumf %174, %175 : vector<16x128xf32>
    %c0_72 = arith.constant 0 : index
    %c0_73 = arith.constant 0 : index
    %c0_74 = arith.constant 0 : index
    %177 = vector.load %arg15[%c0_72, %c0_73, %c0_74] : memref<2x128x32xbf16, #tpu.memory_space<vmem>>, vector<1x128x32xbf16>
    %178 = vector.shape_cast %177 : vector<1x128x32xbf16> to vector<128x32xbf16>
    %179 = arith.truncf %176 : vector<16x128xf32> to vector<16x128xbf16>
    %cst_75 = arith.constant dense<0.000000e+00> : vector<16x32xf32>
    %180 = tpu.matmul %179, %178, %cst_75 {dimension_numbers = #tpu.dot_dimension_numbers<[1], [0], [0], [1], [0, 0, 1, 1], [], []>} : vector<16x128xbf16>, vector<128x32xbf16>, vector<16x32xf32> -> vector<16x32xf32>
    %181 = arith.addf %140, %180 : vector<16x32xf32>
    %c0_76 = arith.constant 0 : index
    %c0_77 = arith.constant 0 : index
    %c0_78 = arith.constant 0 : index
    %182 = vector.load %arg16[%c0_76, %c0_77, %c0_78] : memref<2x1x32xf32, #tpu.memory_space<vmem>>, vector<1x1x32xf32>
    %183 = vector.shape_cast %182 : vector<1x1x32xf32> to vector<1x32xf32>
    %184 = vector.broadcast %183 : vector<1x32xf32> to vector<16x32xf32>
    %185 = arith.addf %181, %184 : vector<16x32xf32>
    %c1 = arith.constant 1 : index
    %c0_79 = arith.constant 0 : index
    %c0_80 = arith.constant 0 : index
    %186 = vector.load %arg5[%c1, %c0_79, %c0_80] : memref<2x1x32xf32, #tpu.memory_space<vmem>>, vector<1x1x32xf32>
    %187 = vector.shape_cast %186 : vector<1x1x32xf32> to vector<1x32xf32>
    %c1_81 = arith.constant 1 : index
    %c0_82 = arith.constant 0 : index
    %c0_83 = arith.constant 0 : index
    %188 = vector.load %arg6[%c1_81, %c0_82, %c0_83] : memref<2x1x32xf32, #tpu.memory_space<vmem>>, vector<1x1x32xf32>
    %189 = vector.shape_cast %188 : vector<1x1x32xf32> to vector<1x32xf32>
    %cst_84 = arith.constant dense<0.000000e+00> : vector<16xf32>
    %190 = vector.multi_reduction <add>, %185, %cst_84 [1] : vector<16x32xf32> to vector<16xf32>
    %191 = vector.shape_cast %190 : vector<16xf32> to vector<16x1xf32>
    %cst_85 = arith.constant 3.200000e+01 : f32
    %192 = vector.broadcast %cst_85 : f32 to vector<16x1xf32>
    %193 = arith.divf %191, %192 : vector<16x1xf32>
    %194 = vector.broadcast %193 : vector<16x1xf32> to vector<16x32xf32>
    %195 = arith.subf %185, %194 : vector<16x32xf32>
    %196 = arith.mulf %195, %195 : vector<16x32xf32>
    %cst_86 = arith.constant dense<0.000000e+00> : vector<16xf32>
    %197 = vector.multi_reduction <add>, %196, %cst_86 [1] : vector<16x32xf32> to vector<16xf32>
    %198 = vector.shape_cast %197 : vector<16xf32> to vector<16x1xf32>
    %cst_87 = arith.constant 3.200000e+01 : f32
    %199 = vector.broadcast %cst_87 : f32 to vector<16x1xf32>
    %200 = arith.divf %198, %199 : vector<16x1xf32>
    %201 = vector.broadcast %193 : vector<16x1xf32> to vector<16x32xf32>
    %202 = arith.subf %185, %201 : vector<16x32xf32>
    %cst_88 = arith.constant 9.99999974E-6 : f32
    %203 = vector.broadcast %cst_88 : f32 to vector<16x1xf32>
    %204 = arith.addf %200, %203 : vector<16x1xf32>
    %205 = math.rsqrt %204 : vector<16x1xf32>
    %206 = vector.broadcast %205 : vector<16x1xf32> to vector<16x32xf32>
    %207 = arith.mulf %202, %206 : vector<16x32xf32>
    %208 = vector.broadcast %187 : vector<1x32xf32> to vector<16x32xf32>
    %209 = arith.mulf %207, %208 : vector<16x32xf32>
    %210 = vector.broadcast %189 : vector<1x32xf32> to vector<16x32xf32>
    %211 = arith.addf %209, %210 : vector<16x32xf32>
    %c1_89 = arith.constant 1 : index
    %c0_90 = arith.constant 0 : index
    %c0_91 = arith.constant 0 : index
    %212 = vector.load %arg9[%c1_89, %c0_90, %c0_91] : memref<2x32x96xbf16, #tpu.memory_space<vmem>>, vector<1x32x96xbf16>
    %213 = vector.shape_cast %212 : vector<1x32x96xbf16> to vector<32x96xbf16>
    %214 = arith.truncf %211 : vector<16x32xf32> to vector<16x32xbf16>
    %cst_92 = arith.constant dense<0.000000e+00> : vector<16x96xf32>
    %215 = tpu.matmul %214, %213, %cst_92 {dimension_numbers = #tpu.dot_dimension_numbers<[1], [0], [0], [1], [0, 0, 1, 1], [], []>} : vector<16x32xbf16>, vector<32x96xbf16>, vector<16x96xf32> -> vector<16x96xf32>
    %c1_93 = arith.constant 1 : index
    %c0_94 = arith.constant 0 : index
    %c0_95 = arith.constant 0 : index
    %216 = vector.load %arg10[%c1_93, %c0_94, %c0_95] : memref<2x1x96xf32, #tpu.memory_space<vmem>>, vector<1x1x96xf32>
    %217 = vector.shape_cast %216 : vector<1x1x96xf32> to vector<1x96xf32>
    %218 = vector.broadcast %217 : vector<1x96xf32> to vector<16x96xf32>
    %219 = arith.addf %215, %218 : vector<16x96xf32>
    %220 = vector.extract_strided_slice %219 {offsets = [0, 0], sizes = [16, 8], strides = [1, 1]} : vector<16x96xf32> to vector<16x8xf32>
    %221 = arith.truncf %220 : vector<16x8xf32> to vector<16x8xbf16>
    %222 = vector.extract_strided_slice %219 {offsets = [0, 32], sizes = [16, 8], strides = [1, 1]} : vector<16x96xf32> to vector<16x8xf32>
    %223 = arith.truncf %222 : vector<16x8xf32> to vector<16x8xbf16>
    %224 = vector.extract_strided_slice %219 {offsets = [0, 64], sizes = [16, 8], strides = [1, 1]} : vector<16x96xf32> to vector<16x8xf32>
    %225 = arith.truncf %224 : vector<16x8xf32> to vector<16x8xbf16>
    %cst_96 = arith.constant dense<0.000000e+00> : vector<16x16xf32>
    %226 = tpu.matmul %221, %223, %cst_96 {dimension_numbers = #tpu.dot_dimension_numbers<[1], [1], [0], [0], [0, 0, 1, 0], [], []>} : vector<16x8xbf16>, vector<16x8xbf16>, vector<16x16xf32> -> vector<16x16xf32>
    %cst_97 = arith.constant 0.353553385 : f32
    %227 = vector.broadcast %cst_97 : f32 to vector<16x16xf32>
    %228 = arith.mulf %226, %227 : vector<16x16xf32>
    %229 = arith.addf %228, %8 : vector<16x16xf32>
    %cst_98 = arith.constant dense<0xFF800000> : vector<16xf32>
    %230 = vector.multi_reduction <maximumf>, %229, %cst_98 [1] : vector<16x16xf32> to vector<16xf32>
    %231 = vector.shape_cast %230 : vector<16xf32> to vector<16x1xf32>
    %232 = vector.broadcast %231 : vector<16x1xf32> to vector<16x16xf32>
    %233 = arith.subf %229, %232 : vector<16x16xf32>
    %234 = math.exp %233 : vector<16x16xf32>
    %cst_99 = arith.constant dense<0.000000e+00> : vector<16xf32>
    %235 = vector.multi_reduction <add>, %234, %cst_99 [1] : vector<16x16xf32> to vector<16xf32>
    %236 = vector.shape_cast %235 : vector<16xf32> to vector<16x1xf32>
    %237 = tpu.reciprocal %236 {approx = true} : vector<16x1xf32> -> vector<16x1xf32>
    %238 = vector.broadcast %237 : vector<16x1xf32> to vector<16x16xf32>
    %239 = arith.mulf %234, %238 : vector<16x16xf32>
    %240 = arith.truncf %239 : vector<16x16xf32> to vector<16x16xbf16>
    %cst_100 = arith.constant dense<0.000000e+00> : vector<16x8xf32>
    %241 = tpu.matmul %240, %225, %cst_100 {dimension_numbers = #tpu.dot_dimension_numbers<[1], [0], [0], [1], [0, 0, 1, 1], [], []>} : vector<16x16xbf16>, vector<16x8xbf16>, vector<16x8xf32> -> vector<16x8xf32>
    %242 = vector.extract_strided_slice %219 {offsets = [0, 8], sizes = [16, 8], strides = [1, 1]} : vector<16x96xf32> to vector<16x8xf32>
    %243 = arith.truncf %242 : vector<16x8xf32> to vector<16x8xbf16>
    %244 = vector.extract_strided_slice %219 {offsets = [0, 40], sizes = [16, 8], strides = [1, 1]} : vector<16x96xf32> to vector<16x8xf32>
    %245 = arith.truncf %244 : vector<16x8xf32> to vector<16x8xbf16>
    %246 = vector.extract_strided_slice %219 {offsets = [0, 72], sizes = [16, 8], strides = [1, 1]} : vector<16x96xf32> to vector<16x8xf32>
    %247 = arith.truncf %246 : vector<16x8xf32> to vector<16x8xbf16>
    %cst_101 = arith.constant dense<0.000000e+00> : vector<16x16xf32>
    %248 = tpu.matmul %243, %245, %cst_101 {dimension_numbers = #tpu.dot_dimension_numbers<[1], [1], [0], [0], [0, 0, 1, 0], [], []>} : vector<16x8xbf16>, vector<16x8xbf16>, vector<16x16xf32> -> vector<16x16xf32>
    %cst_102 = arith.constant 0.353553385 : f32
    %249 = vector.broadcast %cst_102 : f32 to vector<16x16xf32>
    %250 = arith.mulf %248, %249 : vector<16x16xf32>
    %251 = arith.addf %250, %8 : vector<16x16xf32>
    %cst_103 = arith.constant dense<0xFF800000> : vector<16xf32>
    %252 = vector.multi_reduction <maximumf>, %251, %cst_103 [1] : vector<16x16xf32> to vector<16xf32>
    %253 = vector.shape_cast %252 : vector<16xf32> to vector<16x1xf32>
    %254 = vector.broadcast %253 : vector<16x1xf32> to vector<16x16xf32>
    %255 = arith.subf %251, %254 : vector<16x16xf32>
    %256 = math.exp %255 : vector<16x16xf32>
    %cst_104 = arith.constant dense<0.000000e+00> : vector<16xf32>
    %257 = vector.multi_reduction <add>, %256, %cst_104 [1] : vector<16x16xf32> to vector<16xf32>
    %258 = vector.shape_cast %257 : vector<16xf32> to vector<16x1xf32>
    %259 = tpu.reciprocal %258 {approx = true} : vector<16x1xf32> -> vector<16x1xf32>
    %260 = vector.broadcast %259 : vector<16x1xf32> to vector<16x16xf32>
    %261 = arith.mulf %256, %260 : vector<16x16xf32>
    %262 = arith.truncf %261 : vector<16x16xf32> to vector<16x16xbf16>
    %cst_105 = arith.constant dense<0.000000e+00> : vector<16x8xf32>
    %263 = tpu.matmul %262, %247, %cst_105 {dimension_numbers = #tpu.dot_dimension_numbers<[1], [0], [0], [1], [0, 0, 1, 1], [], []>} : vector<16x16xbf16>, vector<16x8xbf16>, vector<16x8xf32> -> vector<16x8xf32>
    %264 = vector.extract_strided_slice %219 {offsets = [0, 16], sizes = [16, 8], strides = [1, 1]} : vector<16x96xf32> to vector<16x8xf32>
    %265 = arith.truncf %264 : vector<16x8xf32> to vector<16x8xbf16>
    %266 = vector.extract_strided_slice %219 {offsets = [0, 48], sizes = [16, 8], strides = [1, 1]} : vector<16x96xf32> to vector<16x8xf32>
    %267 = arith.truncf %266 : vector<16x8xf32> to vector<16x8xbf16>
    %268 = vector.extract_strided_slice %219 {offsets = [0, 80], sizes = [16, 8], strides = [1, 1]} : vector<16x96xf32> to vector<16x8xf32>
    %269 = arith.truncf %268 : vector<16x8xf32> to vector<16x8xbf16>
    %cst_106 = arith.constant dense<0.000000e+00> : vector<16x16xf32>
    %270 = tpu.matmul %265, %267, %cst_106 {dimension_numbers = #tpu.dot_dimension_numbers<[1], [1], [0], [0], [0, 0, 1, 0], [], []>} : vector<16x8xbf16>, vector<16x8xbf16>, vector<16x16xf32> -> vector<16x16xf32>
    %cst_107 = arith.constant 0.353553385 : f32
    %271 = vector.broadcast %cst_107 : f32 to vector<16x16xf32>
    %272 = arith.mulf %270, %271 : vector<16x16xf32>
    %273 = arith.addf %272, %8 : vector<16x16xf32>
    %cst_108 = arith.constant dense<0xFF800000> : vector<16xf32>
    %274 = vector.multi_reduction <maximumf>, %273, %cst_108 [1] : vector<16x16xf32> to vector<16xf32>
    %275 = vector.shape_cast %274 : vector<16xf32> to vector<16x1xf32>
    %276 = vector.broadcast %275 : vector<16x1xf32> to vector<16x16xf32>
    %277 = arith.subf %273, %276 : vector<16x16xf32>
    %278 = math.exp %277 : vector<16x16xf32>
    %cst_109 = arith.constant dense<0.000000e+00> : vector<16xf32>
    %279 = vector.multi_reduction <add>, %278, %cst_109 [1] : vector<16x16xf32> to vector<16xf32>
    %280 = vector.shape_cast %279 : vector<16xf32> to vector<16x1xf32>
    %281 = tpu.reciprocal %280 {approx = true} : vector<16x1xf32> -> vector<16x1xf32>
    %282 = vector.broadcast %281 : vector<16x1xf32> to vector<16x16xf32>
    %283 = arith.mulf %278, %282 : vector<16x16xf32>
    %284 = arith.truncf %283 : vector<16x16xf32> to vector<16x16xbf16>
    %cst_110 = arith.constant dense<0.000000e+00> : vector<16x8xf32>
    %285 = tpu.matmul %284, %269, %cst_110 {dimension_numbers = #tpu.dot_dimension_numbers<[1], [0], [0], [1], [0, 0, 1, 1], [], []>} : vector<16x16xbf16>, vector<16x8xbf16>, vector<16x8xf32> -> vector<16x8xf32>
    %286 = vector.extract_strided_slice %219 {offsets = [0, 24], sizes = [16, 8], strides = [1, 1]} : vector<16x96xf32> to vector<16x8xf32>
    %287 = arith.truncf %286 : vector<16x8xf32> to vector<16x8xbf16>
    %288 = vector.extract_strided_slice %219 {offsets = [0, 56], sizes = [16, 8], strides = [1, 1]} : vector<16x96xf32> to vector<16x8xf32>
    %289 = arith.truncf %288 : vector<16x8xf32> to vector<16x8xbf16>
    %290 = vector.extract_strided_slice %219 {offsets = [0, 88], sizes = [16, 8], strides = [1, 1]} : vector<16x96xf32> to vector<16x8xf32>
    %291 = arith.truncf %290 : vector<16x8xf32> to vector<16x8xbf16>
    %cst_111 = arith.constant dense<0.000000e+00> : vector<16x16xf32>
    %292 = tpu.matmul %287, %289, %cst_111 {dimension_numbers = #tpu.dot_dimension_numbers<[1], [1], [0], [0], [0, 0, 1, 0], [], []>} : vector<16x8xbf16>, vector<16x8xbf16>, vector<16x16xf32> -> vector<16x16xf32>
    %cst_112 = arith.constant 0.353553385 : f32
    %293 = vector.broadcast %cst_112 : f32 to vector<16x16xf32>
    %294 = arith.mulf %292, %293 : vector<16x16xf32>
    %295 = arith.addf %294, %8 : vector<16x16xf32>
    %cst_113 = arith.constant dense<0xFF800000> : vector<16xf32>
    %296 = vector.multi_reduction <maximumf>, %295, %cst_113 [1] : vector<16x16xf32> to vector<16xf32>
    %297 = vector.shape_cast %296 : vector<16xf32> to vector<16x1xf32>
    %298 = vector.broadcast %297 : vector<16x1xf32> to vector<16x16xf32>
    %299 = arith.subf %295, %298 : vector<16x16xf32>
    %300 = math.exp %299 : vector<16x16xf32>
    %cst_114 = arith.constant dense<0.000000e+00> : vector<16xf32>
    %301 = vector.multi_reduction <add>, %300, %cst_114 [1] : vector<16x16xf32> to vector<16xf32>
    %302 = vector.shape_cast %301 : vector<16xf32> to vector<16x1xf32>
    %303 = tpu.reciprocal %302 {approx = true} : vector<16x1xf32> -> vector<16x1xf32>
    %304 = vector.broadcast %303 : vector<16x1xf32> to vector<16x16xf32>
    %305 = arith.mulf %300, %304 : vector<16x16xf32>
    %306 = arith.truncf %305 : vector<16x16xf32> to vector<16x16xbf16>
    %cst_115 = arith.constant dense<0.000000e+00> : vector<16x8xf32>
    %307 = tpu.matmul %306, %291, %cst_115 {dimension_numbers = #tpu.dot_dimension_numbers<[1], [0], [0], [1], [0, 0, 1, 1], [], []>} : vector<16x16xbf16>, vector<16x8xbf16>, vector<16x8xf32> -> vector<16x8xf32>
    %308 = tpu.concatenate %241, %263, %285, %307 in 1 : vector<16x8xf32>, vector<16x8xf32>, vector<16x8xf32>, vector<16x8xf32> -> vector<16x32xf32>
    %c1_116 = arith.constant 1 : index
    %c0_117 = arith.constant 0 : index
    %c0_118 = arith.constant 0 : index
    %309 = vector.load %arg11[%c1_116, %c0_117, %c0_118] : memref<2x32x32xbf16, #tpu.memory_space<vmem>>, vector<1x32x32xbf16>
    %310 = vector.shape_cast %309 : vector<1x32x32xbf16> to vector<32x32xbf16>
    %311 = arith.truncf %308 : vector<16x32xf32> to vector<16x32xbf16>
    %cst_119 = arith.constant dense<0.000000e+00> : vector<16x32xf32>
    %312 = tpu.matmul %311, %310, %cst_119 {dimension_numbers = #tpu.dot_dimension_numbers<[1], [0], [0], [1], [0, 0, 1, 1], [], []>} : vector<16x32xbf16>, vector<32x32xbf16>, vector<16x32xf32> -> vector<16x32xf32>
    %c1_120 = arith.constant 1 : index
    %c0_121 = arith.constant 0 : index
    %c0_122 = arith.constant 0 : index
    %313 = vector.load %arg12[%c1_120, %c0_121, %c0_122] : memref<2x1x32xf32, #tpu.memory_space<vmem>>, vector<1x1x32xf32>
    %314 = vector.shape_cast %313 : vector<1x1x32xf32> to vector<1x32xf32>
    %315 = vector.broadcast %314 : vector<1x32xf32> to vector<16x32xf32>
    %316 = arith.addf %312, %315 : vector<16x32xf32>
    %317 = arith.addf %185, %316 : vector<16x32xf32>
    %c1_123 = arith.constant 1 : index
    %c0_124 = arith.constant 0 : index
    %c0_125 = arith.constant 0 : index
    %318 = vector.load %arg7[%c1_123, %c0_124, %c0_125] : memref<2x1x32xf32, #tpu.memory_space<vmem>>, vector<1x1x32xf32>
    %319 = vector.shape_cast %318 : vector<1x1x32xf32> to vector<1x32xf32>
    %c1_126 = arith.constant 1 : index
    %c0_127 = arith.constant 0 : index
    %c0_128 = arith.constant 0 : index
    %320 = vector.load %arg8[%c1_126, %c0_127, %c0_128] : memref<2x1x32xf32, #tpu.memory_space<vmem>>, vector<1x1x32xf32>
    %321 = vector.shape_cast %320 : vector<1x1x32xf32> to vector<1x32xf32>
    %cst_129 = arith.constant dense<0.000000e+00> : vector<16xf32>
    %322 = vector.multi_reduction <add>, %317, %cst_129 [1] : vector<16x32xf32> to vector<16xf32>
    %323 = vector.shape_cast %322 : vector<16xf32> to vector<16x1xf32>
    %cst_130 = arith.constant 3.200000e+01 : f32
    %324 = vector.broadcast %cst_130 : f32 to vector<16x1xf32>
    %325 = arith.divf %323, %324 : vector<16x1xf32>
    %326 = vector.broadcast %325 : vector<16x1xf32> to vector<16x32xf32>
    %327 = arith.subf %317, %326 : vector<16x32xf32>
    %328 = arith.mulf %327, %327 : vector<16x32xf32>
    %cst_131 = arith.constant dense<0.000000e+00> : vector<16xf32>
    %329 = vector.multi_reduction <add>, %328, %cst_131 [1] : vector<16x32xf32> to vector<16xf32>
    %330 = vector.shape_cast %329 : vector<16xf32> to vector<16x1xf32>
    %cst_132 = arith.constant 3.200000e+01 : f32
    %331 = vector.broadcast %cst_132 : f32 to vector<16x1xf32>
    %332 = arith.divf %330, %331 : vector<16x1xf32>
    %333 = vector.broadcast %325 : vector<16x1xf32> to vector<16x32xf32>
    %334 = arith.subf %317, %333 : vector<16x32xf32>
    %cst_133 = arith.constant 9.99999974E-6 : f32
    %335 = vector.broadcast %cst_133 : f32 to vector<16x1xf32>
    %336 = arith.addf %332, %335 : vector<16x1xf32>
    %337 = math.rsqrt %336 : vector<16x1xf32>
    %338 = vector.broadcast %337 : vector<16x1xf32> to vector<16x32xf32>
    %339 = arith.mulf %334, %338 : vector<16x32xf32>
    %340 = vector.broadcast %319 : vector<1x32xf32> to vector<16x32xf32>
    %341 = arith.mulf %339, %340 : vector<16x32xf32>
    %342 = vector.broadcast %321 : vector<1x32xf32> to vector<16x32xf32>
    %343 = arith.addf %341, %342 : vector<16x32xf32>
    %c1_134 = arith.constant 1 : index
    %c0_135 = arith.constant 0 : index
    %c0_136 = arith.constant 0 : index
    %344 = vector.load %arg13[%c1_134, %c0_135, %c0_136] : memref<2x32x128xbf16, #tpu.memory_space<vmem>>, vector<1x32x128xbf16>
    %345 = vector.shape_cast %344 : vector<1x32x128xbf16> to vector<32x128xbf16>
    %346 = arith.truncf %343 : vector<16x32xf32> to vector<16x32xbf16>
    %cst_137 = arith.constant dense<0.000000e+00> : vector<16x128xf32>
    %347 = tpu.matmul %346, %345, %cst_137 {dimension_numbers = #tpu.dot_dimension_numbers<[1], [0], [0], [1], [0, 0, 1, 1], [], []>} : vector<16x32xbf16>, vector<32x128xbf16>, vector<16x128xf32> -> vector<16x128xf32>
    %c1_138 = arith.constant 1 : index
    %c0_139 = arith.constant 0 : index
    %c0_140 = arith.constant 0 : index
    %348 = vector.load %arg14[%c1_138, %c0_139, %c0_140] : memref<2x1x128xf32, #tpu.memory_space<vmem>>, vector<1x1x128xf32>
    %349 = vector.shape_cast %348 : vector<1x1x128xf32> to vector<1x128xf32>
    %350 = vector.broadcast %349 : vector<1x128xf32> to vector<16x128xf32>
    %351 = arith.addf %347, %350 : vector<16x128xf32>
    %cst_141 = arith.constant 0.000000e+00 : f32
    %352 = vector.broadcast %cst_141 : f32 to vector<16x128xf32>
    %353 = arith.maximumf %351, %352 : vector<16x128xf32>
    %c1_142 = arith.constant 1 : index
    %c0_143 = arith.constant 0 : index
    %c0_144 = arith.constant 0 : index
    %354 = vector.load %arg15[%c1_142, %c0_143, %c0_144] : memref<2x128x32xbf16, #tpu.memory_space<vmem>>, vector<1x128x32xbf16>
    %355 = vector.shape_cast %354 : vector<1x128x32xbf16> to vector<128x32xbf16>
    %356 = arith.truncf %353 : vector<16x128xf32> to vector<16x128xbf16>
    %cst_145 = arith.constant dense<0.000000e+00> : vector<16x32xf32>
    %357 = tpu.matmul %356, %355, %cst_145 {dimension_numbers = #tpu.dot_dimension_numbers<[1], [0], [0], [1], [0, 0, 1, 1], [], []>} : vector<16x128xbf16>, vector<128x32xbf16>, vector<16x32xf32> -> vector<16x32xf32>
    %358 = arith.addf %317, %357 : vector<16x32xf32>
    %c1_146 = arith.constant 1 : index
    %c0_147 = arith.constant 0 : index
    %c0_148 = arith.constant 0 : index
    %359 = vector.load %arg16[%c1_146, %c0_147, %c0_148] : memref<2x1x32xf32, #tpu.memory_space<vmem>>, vector<1x1x32xf32>
    %360 = vector.shape_cast %359 : vector<1x1x32xf32> to vector<1x32xf32>
    %361 = vector.broadcast %360 : vector<1x32xf32> to vector<16x32xf32>
    %362 = arith.addf %358, %361 : vector<16x32xf32>
    %c0_149 = arith.constant 0 : index
    %c0_150 = arith.constant 0 : index
    %363 = vector.load %arg17[%c0_149, %c0_150] : memref<1x32xf32, #tpu.memory_space<vmem>>, vector<1x32xf32>
    %c0_151 = arith.constant 0 : index
    %c0_152 = arith.constant 0 : index
    %364 = vector.load %arg18[%c0_151, %c0_152] : memref<1x32xf32, #tpu.memory_space<vmem>>, vector<1x32xf32>
    %cst_153 = arith.constant dense<0.000000e+00> : vector<16xf32>
    %365 = vector.multi_reduction <add>, %362, %cst_153 [1] : vector<16x32xf32> to vector<16xf32>
    %366 = vector.shape_cast %365 : vector<16xf32> to vector<16x1xf32>
    %cst_154 = arith.constant 3.200000e+01 : f32
    %367 = vector.broadcast %cst_154 : f32 to vector<16x1xf32>
    %368 = arith.divf %366, %367 : vector<16x1xf32>
    %369 = vector.broadcast %368 : vector<16x1xf32> to vector<16x32xf32>
    %370 = arith.subf %362, %369 : vector<16x32xf32>
    %371 = arith.mulf %370, %370 : vector<16x32xf32>
    %cst_155 = arith.constant dense<0.000000e+00> : vector<16xf32>
    %372 = vector.multi_reduction <add>, %371, %cst_155 [1] : vector<16x32xf32> to vector<16xf32>
    %373 = vector.shape_cast %372 : vector<16xf32> to vector<16x1xf32>
    %cst_156 = arith.constant 3.200000e+01 : f32
    %374 = vector.broadcast %cst_156 : f32 to vector<16x1xf32>
    %375 = arith.divf %373, %374 : vector<16x1xf32>
    %376 = vector.broadcast %368 : vector<16x1xf32> to vector<16x32xf32>
    %377 = arith.subf %362, %376 : vector<16x32xf32>
    %cst_157 = arith.constant 9.99999974E-6 : f32
    %378 = vector.broadcast %cst_157 : f32 to vector<16x1xf32>
    %379 = arith.addf %375, %378 : vector<16x1xf32>
    %380 = math.rsqrt %379 : vector<16x1xf32>
    %381 = vector.broadcast %380 : vector<16x1xf32> to vector<16x32xf32>
    %382 = arith.mulf %377, %381 : vector<16x32xf32>
    %383 = vector.broadcast %363 : vector<1x32xf32> to vector<16x32xf32>
    %384 = arith.mulf %382, %383 : vector<16x32xf32>
    %385 = vector.broadcast %364 : vector<1x32xf32> to vector<16x32xf32>
    %386 = arith.addf %384, %385 : vector<16x32xf32>
    %c0_158 = arith.constant 0 : index
    %c0_159 = arith.constant 0 : index
    %387 = vector.load %arg3[%c0_158, %c0_159] : memref<2x16xf32, #tpu.memory_space<vmem>>, vector<2x16xf32>
    %cst_160 = arith.constant dense<0.000000e+00> : vector<2x32xf32>
    %388 = tpu.matmul %387, %386, %cst_160 {dimension_numbers = #tpu.dot_dimension_numbers<[1], [0], [0], [1], [0, 0, 1, 1], [], []>} : vector<2x16xf32>, vector<16x32xf32>, vector<2x32xf32> -> vector<2x32xf32>
    %c0_161 = arith.constant 0 : index
    %c0_162 = arith.constant 0 : index
    %389 = vector.load %arg19[%c0_161, %c0_162] : memref<32x32xbf16, #tpu.memory_space<vmem>>, vector<32x32xbf16>
    %390 = arith.truncf %388 : vector<2x32xf32> to vector<2x32xbf16>
    %cst_163 = arith.constant dense<0.000000e+00> : vector<2x32xf32>
    %391 = tpu.matmul %390, %389, %cst_163 {dimension_numbers = #tpu.dot_dimension_numbers<[1], [0], [0], [1], [0, 0, 1, 1], [], []>} : vector<2x32xbf16>, vector<32x32xbf16>, vector<2x32xf32> -> vector<2x32xf32>
    %c0_164 = arith.constant 0 : index
    %c0_165 = arith.constant 0 : index
    %392 = vector.load %arg20[%c0_164, %c0_165] : memref<1x32xf32, #tpu.memory_space<vmem>>, vector<1x32xf32>
    %393 = vector.broadcast %392 : vector<1x32xf32> to vector<2x32xf32>
    %394 = arith.addf %391, %393 : vector<2x32xf32>
    %cst_166 = arith.constant 0.000000e+00 : f32
    %395 = vector.broadcast %cst_166 : f32 to vector<2x32xf32>
    %396 = arith.maximumf %394, %395 : vector<2x32xf32>
    %c0_167 = arith.constant 0 : index
    %c0_168 = arith.constant 0 : index
    %397 = vector.load %arg21[%c0_167, %c0_168] : memref<32x128xbf16, #tpu.memory_space<vmem>>, vector<32x128xbf16>
    %398 = arith.truncf %396 : vector<2x32xf32> to vector<2x32xbf16>
    %cst_169 = arith.constant dense<0.000000e+00> : vector<2x128xf32>
    %399 = tpu.matmul %398, %397, %cst_169 {dimension_numbers = #tpu.dot_dimension_numbers<[1], [0], [0], [1], [0, 0, 1, 1], [], []>} : vector<2x32xbf16>, vector<32x128xbf16>, vector<2x128xf32> -> vector<2x128xf32>
    %c0_170 = arith.constant 0 : index
    %c0_171 = arith.constant 0 : index
    %400 = vector.load %arg22[%c0_170, %c0_171] : memref<1x128xf32, #tpu.memory_space<vmem>>, vector<1x128xf32>
    %401 = vector.broadcast %400 : vector<1x128xf32> to vector<2x128xf32>
    %402 = arith.addf %399, %401 : vector<2x128xf32>
    %c0_172 = arith.constant 0 : index
    %c0_173 = arith.constant 0 : index
    %403 = vector.load %arg23[%c0_172, %c0_173] : memref<2x128xf32, #tpu.memory_space<vmem>>, vector<2x128xf32>
    tpu.vector_store %arg23[%c0_172, %c0_173], %402 {strides = array<i32>} : memref<2x128xf32, #tpu.memory_space<vmem>>, vector<2x128xf32>,
    return
  }
}

</mosaic_0001>

<bundles_post_ra>
// kernel: model_forward.1
= control target key start
LH: loop header
LB: loop body
LE: loop exit
PB: predicated region body
PF: predicated region fallthrough
CT: control target
= control target key end

     0   :  { %vm94_vm0 = vcmask 1041408   ;;  %v2885_v0 = vmov 0.0   ;;  %vm2886_vm1 = vmmov 0   ;;  %vm90_vm2 = vcmask 162816   ;;  %s3579_s30 = smov 120   ;;  %s3572_s25 = smov 112   ;;  %s3536_s4 = inlined_call_operand.vmem [shape: bf16[20,32], index: 4, kind: input, shape index: {}]   ;;  %s3537_s0 = inlined_call_operand.vmem [shape: f32[16,20], index: 0, kind: input, shape index: {}]   ;;  %s3538_s1 = inlined_call_operand.vmem [shape: f32[16,32], index: 1, kind: input, shape index: {}]   ;;  %s3539_s9 = inlined_call_operand.vmem [shape: bf16[2,32,96], index: 9, kind: input, shape index: {}]   ;;  %s3540_s5 = inlined_call_operand.vmem [shape: f32[2,1,32], index: 5, kind: input, shape index: {}]   ;;  %s3541_s6 = inlined_call_operand.vmem [shape: f32[2,1,32], index: 6, kind: input, shape index: {}]   ;;  %s3542_s10 = inlined_call_operand.vmem [shape: f32[2,1,96], index: 10, kind: input, shape index: {}]   ;;  %s3543_s2 = inlined_call_operand.vmem [shape: f32[16,16], index: 2, kind: input, shape index: {}]   ;;  %s3544_s11 = inlined_call_operand.vmem [shape: bf16[2,32,32], index: 11, kind: input, shape index: {}]   ;;  %s3545_s12 = inlined_call_operand.vmem [shape: f32[2,1,32], index: 12, kind: input, shape index: {}]   ;;  %s3546_s13 = inlined_call_operand.vmem [shape: bf16[2,32,128], index: 13, kind: input, shape index: {}]   ;;  %s3547_s15 = inlined_call_operand.vmem [shape: bf16[2,128,32], index: 15, kind: input, shape index: {}]   ;;  %s3548_s7 = inlined_call_operand.vmem [shape: f32[2,1,32], index: 7, kind: input, shape index: {}]   ;;  %s3549_s8 = inlined_call_operand.vmem [shape: f32[2,1,32], index: 8, kind: input, shape index: {}]   ;;  %s3550_s14 = inlined_call_operand.vmem [shape: f32[2,1,128], index: 14, kind: input, shape index: {}]   ;;  %s3551_s16 = inlined_call_operand.vmem [shape: f32[2,1,32], index: 16, kind: input, shape index: {}]   ;;  %s3552_s19 = inlined_call_operand.vmem [shape: bf16[32,32], index: 19, kind: input, shape index: {}]   ;;  %s3553_s17 = inlined_call_operand.vmem [shape: f32[1,32], index: 17, kind: input, shape index: {}]   ;;  %s3554_s18 = inlined_call_operand.vmem [shape: f32[1,32], index: 18, kind: input, shape index: {}]   ;;  %s3555_s3 = inlined_call_operand.vmem [shape: f32[2,16], index: 3, kind: input, shape index: {}]   ;;  %s3556_s21 = inlined_call_operand.vmem [shape: bf16[32,128], index: 21, kind: input, shape index: {}]   ;;  %s3557_s20 = inlined_call_operand.vmem [shape: f32[1,32], index: 20, kind: input, shape index: {}]   ;;  %s3558_s22 = inlined_call_operand.vmem [shape: f32[1,128], index: 22, kind: input, shape index: {}]   ;;  %s3559_s23 = inlined_call_operand.vmem [shape: f32[2,128], index: 23, kind: output, shape index: {}]  }
   0x1   :  { %3580 = sst [smem:[#allocation2_spill]] %s3536_s4  ;;  %2504 = vmatprep.subr.bf16.mxu0 %v2885_v0  ;;  %2508 = vmatprep.mubr.msk.bf16.mxu0 %vm2886_vm1, %v2885_v0  ;;  %vm149_vm3 = vcmask 261120   ;;  %s2887_s4 = smov 88   ;;  %vm265_vm4 = vcmask 64512   ;;  %vm317_vm5 = vcmask 130048   ;;  %vm791_vm6 = vcmask 195584  }
   0x2   :  { %3581 = sst [smem:[#allocation3_spill]] %s3537_s0  ;;  %2512 = vmatprep.subr.bf16.mxu1 %v2885_v0  ;;  %2516 = vmatprep.mubr.msk.bf16.mxu1 %vm2886_vm1, %v2885_v0  ;;  %s3568_s0 = smov 104  }
   0x3   :  { %3582 = sst [smem:[#allocation4_spill]] %s3538_s1  ;;  %s3577_s26 = smov 72  }
   0x4   :  { %3583 = sst [smem:[#allocation5_spill]] %s3539_s9  ;;  %s3569_s27 = smov 40  }
   0x5   :  { %3584 = sst [smem:[#allocation6_spill]] %s3540_s5  ;;  %s2888_s5 = smov 96  }
   0x6   :  { %3585 = sst [smem:[#allocation7_spill]] %s3541_s6  ;;  %s3578_s6 = smov 80  }
   0x7   :  { %3586 = sst [smem:[#allocation8_spill]] %s3542_s10  ;;  %s3571_s10 = smov 48  }
   0x8   :  { %3587 = sst [smem:[#allocation9_spill]] %s3543_s2 }
   0x9   :  { %s3588_s24 = sld [smem:[#allocation2_spill]] }
   0xa   :  { %s3589_s1 = sld [smem:[#allocation3_spill]] }
   0xb   :  { %s3590_s29 = sld [smem:[#allocation4_spill]] }
   0xc   :  { %s3593_s2 = sld [smem:[#allocation7_spill]] }
   0xd   :  { %s3594_s9 = sld [smem:[#allocation8_spill]] }
   0xe   :  { %s3595_s28 = sld [smem:[#allocation9_spill]] }
   0xf   :  { %v2765_v1 = vld [vmem:[%s3588_s24 + $0x8] ss:$0 sps:$4 sm:$0x33]   ;;  %v2766_v3 = vld [vmem:[%s3588_s24] sm:$0xff]   ;;  %s3591_s24 = sld [smem:[#allocation5_spill]] }
  0x10   :  { %v96_v2 = vsel %vm94_vm0, %v2765_v1, 0  ;;  %v75_v4 = vld [vmem:[%s3589_s1] sm:$0xff]  ;;  %v76_v5 = vld [vmem:[%s3589_s1 + $0x8] sm:$0xff]  ;;  %s3592_s1 = sld [smem:[#allocation6_spill]] }
  0x11   :  { %2505 = vmatpush3.bf16.msra.mxu0 %v96_v2  ;;  %v80_v6 = vpack.c.bf16 %v76_v5, %v75_v4  ;;  %v141_v8 = vld [vmem:[%s3590_s29] sm:$0xff]  ;;  %v142_v13 = vld [vmem:[%s3590_s29 + $0x8] sm:$0xff]  ;;  %s3570_s29 = smov 56  }
  0x12   :  { %2506 = vmatprep.subr.bf16.mxu0 %v2885_v0  ;;  %v2312_v43 = vld [vmem:[%s3593_s2] ss:$0 sm:$0xff] }
  0x13   :  { %v2313_v49 = vld [vmem:[%s3594_s9] ss:$0 sm:$0xff] }
  0x14   :  { %v3121_v5 = vld [vmem:[%s3595_s28] sm:$0xff] }
  0x15   :  { %2507 = vmatpush3.bf16.msra.mxu0 %v2766_v3  ;;  %v2767_v29 = vld [vmem:[%s3591_s24 + $0x8] sm:$0xff]   ;;  %v2768_v30 = vld [vmem:[%s3591_s24] sm:$0xff]  }
  0x16   :  { %2520 = vmatprep.subr.bf16.mxu0 %v2885_v0  ;;  %2513 = vmatpush3.bf16.msra.mxu1 %v2767_v29  ;;  %v2311_v39 = vld [vmem:[%s3592_s1] ss:$0 sm:$0xff] }
  0x17   :  { %2514 = vmatprep.subr.bf16.mxu1 %v2885_v0 }
  0x18   :  { %2509 = vmatmul.mubr.msk.bf16.vlgmr.msra.gmra.mxu0 %vm90_vm2, %v80_v6 }
  0x19   :  { %2522 = vmatprep.mubr.msk.bf16.mxu0 %vm2886_vm1, %v2885_v0 }
  0x1a   :  { %2515 = vmatpush3.bf16.msra.mxu1 %v2768_v30 }
  0x1b   :  { %2526 = vmatprep.subr.bf16.mxu1 %v2885_v0 }
  0xd8   :  { %v132_v7 = vpop.f32.mrf.mxu0 }
  0xd9   :  { %v139_v9 = vmul.f32 5.656854, %v132_v7 }
  0xda   :  { %v2510_v10 = vpop.f32.mrf.mxu0 }
  0xdb   :  { %v3046_v11 = vadd.f32 %v141_v8, %v139_v9  ;;  %v3127_v10 = vld [vmem:[%s3595_s28 + $0x8] sm:$0xff] }
  0xdc   :  { %v135_v12 = vpop.f32.mrf.mxu0 }
  0xdd   :  { %v140_v14 = vmul.f32 5.656854, %v135_v12  ;;  %v150_v15 = vsel %vm149_vm3, %v3046_v11, 0.0 }
  0xde   :  { %151 = vadd.xlane.f32.xlu0 %v150_v15  ;;  %v2511_v16 = vpop.f32.mrf.mxu0 }
  0xdf   :  { %v3053_v17 = vadd.f32 %v142_v13, %v140_v14 }
  0xe1   :  { %v153_v18 = vsel %vm149_vm3, %v3053_v17, 0.0 }
  0xe2   :  { %154 = vadd.xlane.f32.xlu0 %v153_v18 }
 0x167   :  { %v152_v19 = vpop.xlane.xlu0 %151 }
 0x168   :  { %v157_v20 = vmul.f32 0.03125, %v152_v19 }
 0x16a   :  { %v159_v21 = vsub.f32 %v3046_v11, %v157_v20 }
 0x16b   :  { %v155_v22 = vpop.xlane.xlu0 %154 }
 0x16c   :  { %v158_v23 = vmul.f32 0.03125, %v155_v22  ;;  %v161_v24 = vmul.f32 %v159_v21, %v159_v21 }
 0x16e   :  { %v160_v25 = vsub.f32 %v3053_v17, %v158_v23  ;;  %v163_v26 = vsel %vm149_vm3, %v161_v24, 0.0 }
 0x16f   :  { %164 = vadd.xlane.f32.xlu1 %v163_v26 }
 0x170   :  { %v162_v27 = vmul.f32 %v160_v25, %v160_v25 }
 0x172   :  { %v166_v28 = vsel %vm149_vm3, %v162_v27, 0.0 }
 0x173   :  { %167 = vadd.xlane.f32.xlu1 %v166_v28 }
 0x1f8   :  { %v165_v31 = vpop.xlane.xlu1 %164 }
 0x1f9   :  { %v169_v32 = vmul.f32 0.03125, %v165_v31 }
 0x1fb   :  { %v171_v33 = vadd.f32 1e-05, %v169_v32 }
 0x1fc   :  { %v168_v34 = vpop.xlane.xlu1 %167 }
 0x1fd   :  { %2799 = vrsqrt.f32 %v171_v33  ;;  %v170_v35 = vmul.f32 0.03125, %v168_v34 }
 0x1ff   :  { %v172_v36 = vadd.f32 1e-05, %v170_v35 }
 0x201   :  { %2801 = vrsqrt.f32 %v172_v36 }
 0x20a   :  { %v2800_v37 = vpop.eup %2799 }
 0x20b   :  { %v175_v38 = vmul.f32 %v2800_v37, %v159_v21 }
 0x20d   :  { %v183_v42 = vmul.f32 %v2311_v39, %v175_v38 }
 0x20e   :  { %v2802_v40 = vpop.eup %2801 }
 0x20f   :  { %v176_v41 = vmul.f32 %v2802_v40, %v160_v25  ;;  %v191_v45 = vadd.f32 %v2312_v43, %v183_v42 }
 0x211   :  { %v184_v44 = vmul.f32 %v2311_v39, %v176_v41 }
 0x213   :  { %v192_v46 = vadd.f32 %v2312_v43, %v184_v44 }
 0x215   :  { %v197_v47 = vpack.c.bf16 %v192_v46, %v191_v45 }
 0x217   :  { %2517 = vmatmul.mubr.msk.bf16.vlgmr.msra.gmra.mxu1 %vm149_vm3, %v197_v47 }
 0x218   :  { %2528 = vmatprep.mubr.msk.bf16.mxu1 %vm2886_vm1, %v2885_v0 }
 0x2d7   :  { %v254_v48 = vpop.f32.mrf.mxu1 }
 0x2d8   :  { %v255_v52 = vadd.f32 %v2313_v49, %v254_v48 }
 0x2d9   :  { %v2518_v50 = vpop.f32.mrf.mxu1 }
 0x2db   :  { %v257_v51 = vpop.f32.mrf.mxu1 }
 0x2dc   :  { %v258_v53 = vadd.f32 %v2313_v49, %v257_v51 }
 0x2dd   :  { %v2519_v54 = vpop.f32.mrf.mxu1 }
 0x2de   :  { %v3081_v55 = vpack.c.bf16 %v258_v53, %v255_v52 }
 0x2e0   :  { %390 = vrot.lane.b32.xlu1 %v3081_v55, %s2887_s4  ;;  %263 = vrot.lane.b32.xlu0 %v3081_v55, %s2888_s5 }
 0x2e4   :  { %388 = vrot.lane.b32.xlu1 %v3081_v55, %s3579_s30  ;;  %513 = vrot.lane.b32.xlu0 %v3081_v55, %s3572_s25  ;;  %s3601_s30 = smov 104  }
 0x2e8   :  { %515 = vrot.lane.b32.xlu1 %v3081_v55, %s3578_s6  ;;  %638 = vrot.lane.b32.xlu0 %v3081_v55, %s3568_s0  ;;  %s3573_s0 = smov 64  }
 0x2ec   :  { %640 = vrot.lane.b32.xlu1 %v3081_v55, %s3577_s26  ;;  %s3597_s26 = smov 80  }
 0x352   :  { %v264_v56 = vpop.permute.xlu0 %263  ;;  %v391_v58 = vpop.permute.xlu1 %390 }
 0x353   :  { %v270_v57 = vsel %vm265_vm4, %v264_v56, 0  ;;  %v396_v60 = vsel %vm265_vm4, %v391_v58, 0 }
 0x354   :  { %2521 = vmatpush3.bf16.xpose.msra.mxu0 %v270_v57 }
 0x355   :  { %2532 = vmatprep.subr.bf16.mxu0 %v2885_v0 }
 0x356   :  { %v389_v59 = vpop.permute.xlu1 %388  ;;  %v514_v1 = vpop.permute.xlu0 %513 }
 0x35a   :  { %v516_v61 = vpop.permute.xlu1 %515  ;;  %v639_v3 = vpop.permute.xlu0 %638 }
 0x35b   :  { %2523 = vmatmul.mubr.msk.bf16.vlgmr.msra.gmra.mxu0 %vm265_vm4, %v3081_v55  ;;  %v521_v62 = vsel %vm265_vm4, %v516_v61, 0 }
 0x35c   :  { %2533 = vmatpush3.bf16.xpose.msra.mxu0 %v396_v60  ;;  %2534 = vmatprep.mubr.msk.bf16.mxu0 %vm2886_vm1, %v2885_v0 }
 0x35d   :  { %2544 = vmatprep.subr.bf16.mxu0 %v2885_v0 }
 0x35e   :  { %v641_v63 = vpop.permute.xlu1 %640 }
 0x35f   :  { %v646_v2 = vsel %vm265_vm4, %v641_v63, 0 }
 0x363   :  { %2535 = vmatmul.mubr.msk.bf16.vlgmr.msra.gmra.mxu0 %vm265_vm4, %v389_v59 }
 0x364   :  { %2545 = vmatpush3.bf16.xpose.msra.mxu0 %v521_v62  ;;  %2546 = vmatprep.mubr.msk.bf16.mxu0 %vm2886_vm1, %v2885_v0 }
 0x365   :  { %2556 = vmatprep.subr.bf16.mxu0 %v2885_v0 }
 0x36b   :  { %2547 = vmatmul.mubr.msk.bf16.vlgmr.msra.gmra.mxu0 %vm265_vm4, %v514_v1 }
 0x36c   :  { %2557 = vmatpush3.bf16.xpose.msra.mxu0 %v646_v2  ;;  %2558 = vmatprep.mubr.msk.bf16.mxu0 %vm2886_vm1, %v2885_v0 }
 0x36d   :  { %2568 = vmatprep.subr.bf16.mxu0 %v2885_v0 }
 0x373   :  { %2559 = vmatmul.mubr.msk.bf16.vlgmr.msra.gmra.mxu0 %vm265_vm4, %v639_v3 }
 0x374   :  { %2572 = vmatprep.mubr.msk.bf16.mxu0 %vm2886_vm1, %v2885_v0 }
 0x41b   :  { %v306_v4 = vpop.f32.mrf.mxu0 }
 0x41c   :  { %v313_v6 = vmul.f32 0.35355338, %v306_v4 }
 0x41d   :  { %v2524_v7 = vpop.f32.mrf.mxu0 }
 0x41e   :  { %v315_v8 = vadd.f32 %v313_v6, %v3121_v5 }
 0x41f   :  { %v309_v9 = vpop.f32.mrf.mxu0 }
 0x420   :  { %v314_v12 = vmul.f32 0.35355338, %v309_v9  ;;  %v318_v13 = vsel %vm317_vm5, %v315_v8, -inf }
 0x421   :  { %319 = vmax.xlane.f32.xlu1 %v318_v13  ;;  %v2525_v14 = vpop.f32.mrf.mxu0 }
 0x422   :  { %v316_v15 = vadd.f32 %v314_v12, %v3127_v10 }
 0x423   :  { %v432_v16 = vpop.f32.mrf.mxu0 }
 0x424   :  { %v439_v18 = vmul.f32 0.35355338, %v432_v16  ;;  %v321_v19 = vsel %vm317_vm5, %v316_v15, -inf }
 0x425   :  { %322 = vmax.xlane.f32.xlu0 %v321_v19  ;;  %v2536_v20 = vpop.f32.mrf.mxu0 }
 0x426   :  { %v441_v21 = vadd.f32 %v439_v18, %v3121_v5 }
 0x427   :  { %v435_v22 = vpop.f32.mrf.mxu0 }
 0x428   :  { %v440_v23 = vmul.f32 0.35355338, %v435_v22  ;;  %v443_v24 = vsel %vm317_vm5, %v441_v21, -inf }
 0x429   :  { %444 = vmax.xlane.f32.xlu0 %v443_v24  ;;  %v2537_v25 = vpop.f32.mrf.mxu0 }
 0x42a   :  { %v442_v26 = vadd.f32 %v440_v23, %v3127_v10 }
 0x42b   :  { %v557_v27 = vpop.f32.mrf.mxu0 }
 0x42c   :  { %v564_v28 = vmul.f32 0.35355338, %v557_v27  ;;  %v446_v29 = vsel %vm317_vm5, %v442_v26, -inf }
 0x42d   :  { %447 = vmax.xlane.f32.xlu0 %v446_v29  ;;  %v2548_v30 = vpop.f32.mrf.mxu0 }
 0x42e   :  { %v566_v31 = vadd.f32 %v564_v28, %v3121_v5 }
 0x42f   :  { %v560_v32 = vpop.f32.mrf.mxu0 }
 0x430   :  { %v565_v33 = vmul.f32 0.35355338, %v560_v32  ;;  %v568_v34 = vsel %vm317_vm5, %v566_v31, -inf }
 0x431   :  { %569 = vmax.xlane.f32.xlu1 %v568_v34  ;;  %v2549_v35 = vpop.f32.mrf.mxu0 }
 0x432   :  { %v567_v36 = vadd.f32 %v565_v33, %v3127_v10 }
 0x433   :  { %v682_v37 = vpop.f32.mrf.mxu0 }
 0x434   :  { %v689_v38 = vmul.f32 0.35355338, %v682_v37  ;;  %v571_v39 = vsel %vm317_vm5, %v567_v36, -inf }
 0x435   :  { %572 = vmax.xlane.f32.xlu0 %v571_v39  ;;  %v2560_v40 = vpop.f32.mrf.mxu0 }
 0x436   :  { %v691_v41 = vadd.f32 %v689_v38, %v3121_v5 }
 0x437   :  { %v685_v42 = vpop.f32.mrf.mxu0 }
 0x438   :  { %v690_v43 = vmul.f32 0.35355338, %v685_v42  ;;  %v693_v44 = vsel %vm317_vm5, %v691_v41, -inf }
 0x439   :  { %694 = vmax.xlane.f32.xlu1 %v693_v44  ;;  %v2561_v45 = vpop.f32.mrf.mxu0 }
 0x43a   :  { %v692_v46 = vadd.f32 %v690_v43, %v3127_v10 }
 0x43c   :  { %v696_v47 = vsel %vm317_vm5, %v692_v46, -inf }
 0x43d   :  { %697 = vmax.xlane.f32.xlu0 %v696_v47 }
 0x44a   :  { %341 = vrot.lane.b32.xlu1 %v3081_v55, %s3573_s0 }
 0x4aa   :  { %v320_v48 = vpop.xlane.xlu1 %319 }
 0x4ab   :  { %v324_v49 = vsub.f32 %v315_v8, %v320_v48 }
 0x4ad   :  { %v326_v50 = vmul.f32 1.442695, %v324_v49 }
 0x4ae   :  { %v323_v51 = vpop.xlane.xlu0 %322 }
 0x4af   :  { %2803 = vpow2.f32 %v326_v50  ;;  %v325_v52 = vsub.f32 %v316_v15, %v323_v51 }
 0x4b1   :  { %v328_v53 = vmul.f32 1.442695, %v325_v52 }
 0x4b2   :  { %v445_v54 = vpop.xlane.xlu0 %444 }
 0x4b3   :  { %2805 = vpow2.f32 %v328_v53  ;;  %v449_v56 = vsub.f32 %v441_v21, %v445_v54 }
 0x4b5   :  { %v451_v57 = vmul.f32 1.442695, %v449_v56 }
 0x4b6   :  { %v448_v58 = vpop.xlane.xlu0 %447 }
 0x4b7   :  { %2807 = vpow2.f32 %v451_v57  ;;  %v450_v59 = vsub.f32 %v442_v26, %v448_v58 }
 0x4b9   :  { %v453_v60 = vmul.f32 1.442695, %v450_v59 }
 0x4ba   :  { %v570_v61 = vpop.xlane.xlu1 %569 }
 0x4bb   :  { %2809 = vpow2.f32 %v453_v60  ;;  %v574_v62 = vsub.f32 %v566_v31, %v570_v61 }
 0x4bc   :  { %v2804_v63 = vpop.eup %2803 }
 0x4bd   :  { %v576_v1 = vmul.f32 1.442695, %v574_v62  ;;  %v330_v2 = vsel %vm317_vm5, %v2804_v63, 0.0 }
 0x4be   :  { %v573_v3 = vpop.xlane.xlu0 %572  ;;  %331 = vadd.xlane.f32.xlu1 %v330_v2 }
 0x4bf   :  { %2811 = vpow2.f32 %v576_v1  ;;  %v575_v4 = vsub.f32 %v567_v36, %v573_v3 }
 0x4c0   :  { %v2806_v6 = vpop.eup %2805 }
 0x4c1   :  { %v578_v7 = vmul.f32 1.442695, %v575_v4  ;;  %v333_v8 = vsel %vm317_vm5, %v2806_v6, 0.0 }
 0x4c2   :  { %v695_v9 = vpop.xlane.xlu1 %694  ;;  %334 = vadd.xlane.f32.xlu0 %v333_v8  ;;  %v2769_v8 = vld [vmem:[%s3544_s11 + $0x8] sm:$0xff]  }
 0x4c3   :  { %2813 = vpow2.f32 %v578_v7  ;;  %v699_v12 = vsub.f32 %v691_v41, %v695_v9  ;;  %2569 = vmatpush3.bf16.msra.mxu0 %v2769_v8 }
 0x4c4   :  { %v2808_v13 = vpop.eup %2807  ;;  %2570 = vmatprep.subr.bf16.mxu0 %v2885_v0 }
 0x4c5   :  { %v701_v14 = vmul.f32 1.442695, %v699_v12  ;;  %v455_v15 = vsel %vm317_vm5, %v2808_v13, 0.0 }
 0x4c6   :  { %456 = vadd.xlane.f32.xlu1 %v455_v15  ;;  %v342_v16 = vpop.permute.xlu1 %341  ;;  %v698_v18 = vpop.xlane.xlu0 %697 }
 0x4c7   :  { %2815 = vpow2.f32 %v701_v14  ;;  %v700_v19 = vsub.f32 %v692_v46, %v698_v18  ;;  %2527 = vmatpush3.bf16.msra.mxu1 %v342_v16  ;;  %v2770_v14 = vld [vmem:[%s3544_s11] sm:$0xff]  }
 0x4c8   :  { %v2810_v20 = vpop.eup %2809  ;;  %2538 = vmatprep.subr.bf16.mxu1 %v2885_v0  ;;  %2571 = vmatpush3.bf16.msra.mxu0 %v2770_v14  ;;  %v2329_v14 = vld [vmem:[%s3548_s7] ss:$0 sm:$0xff] }
 0x4c9   :  { %v703_v21 = vmul.f32 1.442695, %v700_v19  ;;  %v458_v22 = vsel %vm317_vm5, %v2810_v20, 0.0  ;;  %2584 = vmatprep.subr.bf16.mxu0 %v2885_v0 }
 0x4ca   :  { %459 = vadd.xlane.f32.xlu0 %v458_v22 }
 0x4cb   :  { %2817 = vpow2.f32 %v703_v21 }
 0x4cc   :  { %v2812_v23 = vpop.eup %2811 }
 0x4cd   :  { %v580_v24 = vsel %vm317_vm5, %v2812_v23, 0.0 }
 0x4ce   :  { %581 = vadd.xlane.f32.xlu1 %v580_v24 }
 0x4d0   :  { %v2814_v25 = vpop.eup %2813 }
 0x4d1   :  { %v583_v26 = vsel %vm317_vm5, %v2814_v25, 0.0 }
 0x4d2   :  { %584 = vadd.xlane.f32.xlu0 %v583_v26 }
 0x4d4   :  { %v2816_v27 = vpop.eup %2815 }
 0x4d5   :  { %v705_v28 = vsel %vm317_vm5, %v2816_v27, 0.0 }
 0x4d6   :  { %706 = vadd.xlane.f32.xlu1 %v705_v28 }
 0x4d8   :  { %v2818_v29 = vpop.eup %2817 }
 0x4d9   :  { %v708_v30 = vsel %vm317_vm5, %v2818_v29, 0.0 }
 0x4da   :  { %709 = vadd.xlane.f32.xlu0 %v708_v30 }
 0x4e7   :  { %591 = vrot.lane.b32.xlu1 %v3081_v55, %s3571_s10  ;;  %s3576_s10 = smov 8  }
 0x4eb   :  { %716 = vrot.lane.b32.xlu1 %v3081_v55, %s3569_s27  ;;  %s3575_s27 = smov 16  }
 0x4f0   :  { %466 = vrot.lane.b32.xlu0 %v3081_v55, %s3570_s29  ;;  %s3574_s29 = smov 24  }
 0x547   :  { %v332_v31 = vpop.xlane.xlu1 %331 }
 0x548   :  { %2819 = vrcp.f32 %v332_v31 }
 0x54b   :  { %v335_v32 = vpop.xlane.xlu0 %334 }
 0x54c   :  { %2821 = vrcp.f32 %v335_v32 }
 0x54f   :  { %v457_v34 = vpop.xlane.xlu1 %456 }
 0x553   :  { %v460_v33 = vpop.xlane.xlu0 %459 }
 0x554   :  { %2823 = vrcp.f32 %v460_v33 }
 0x555   :  { %v2820_v35 = vpop.eup %2819  ;;  %2825 = vrcp.f32 %v457_v34 }
 0x556   :  { %v338_v37 = vmul.f32 %v2820_v35, %v2804_v63 }
 0x557   :  { %v582_v40 = vpop.xlane.xlu1 %581 }
 0x559   :  { %v2822_v36 = vpop.eup %2821 }
 0x55a   :  { %v339_v38 = vmul.f32 %v2822_v36, %v2806_v6 }
 0x55b   :  { %v585_v39 = vpop.xlane.xlu0 %584 }
 0x55c   :  { %v340_v41 = vpack.c.bf16 %v339_v38, %v338_v37  ;;  %2827 = vrcp.f32 %v585_v39 }
 0x55d   :  { %2829 = vrcp.f32 %v582_v40  ;;  %v2325_v40 = vld [vmem:[%s3545_s12] ss:$0 sm:$0xff] }
 0x55e   :  { %2529 = vmatmul.mubr.msk.bf16.vlgmr.msra.gmra.mxu1 %vm317_vm5, %v340_v41 }
 0x55f   :  { %2540 = vmatprep.mubr.msk.bf16.mxu1 %vm2886_vm1, %v2885_v0  ;;  %v707_v44 = vpop.xlane.xlu1 %706 }
 0x561   :  { %v2824_v55 = vpop.eup %2823 }
 0x562   :  { %v2826_v43 = vpop.eup %2825  ;;  %v464_v45 = vmul.f32 %v2824_v55, %v2810_v20 }
 0x563   :  { %v710_v42 = vpop.xlane.xlu0 %709  ;;  %v463_v47 = vmul.f32 %v2826_v43, %v2808_v13  ;;  %v592_v50 = vpop.permute.xlu1 %591 }
 0x564   :  { %2831 = vrcp.f32 %v710_v42 }
 0x565   :  { %2833 = vrcp.f32 %v707_v44  ;;  %v465_v48 = vpack.c.bf16 %v464_v45, %v463_v47 }
 0x567   :  { %v467_v46 = vpop.permute.xlu0 %466  ;;  %v717_v57 = vpop.permute.xlu1 %716 }
 0x568   :  { %2539 = vmatpush3.bf16.msra.mxu1 %v467_v46 }
 0x569   :  { %2550 = vmatprep.subr.bf16.mxu1 %v2885_v0  ;;  %v2828_v49 = vpop.eup %2827 }
 0x56a   :  { %v2830_v51 = vpop.eup %2829  ;;  %v589_v52 = vmul.f32 %v2828_v49, %v2814_v25 }
 0x56b   :  { %2541 = vmatmul.mubr.msk.bf16.vlgmr.msra.gmra.mxu1 %vm317_vm5, %v465_v48  ;;  %v588_v53 = vmul.f32 %v2830_v51, %v2812_v23 }
 0x56c   :  { %2551 = vmatpush3.bf16.msra.mxu1 %v592_v50  ;;  %2552 = vmatprep.mubr.msk.bf16.mxu1 %vm2886_vm1, %v2885_v0 }
 0x56d   :  { %2562 = vmatprep.subr.bf16.mxu1 %v2885_v0  ;;  %v590_v54 = vpack.c.bf16 %v589_v52, %v588_v53 }
 0x571   :  { %v2832_v56 = vpop.eup %2831 }
 0x572   :  { %v2834_v58 = vpop.eup %2833  ;;  %v714_v59 = vmul.f32 %v2832_v56, %v2818_v29 }
 0x573   :  { %2553 = vmatmul.mubr.msk.bf16.vlgmr.msra.gmra.mxu1 %vm317_vm5, %v590_v54  ;;  %v713_v60 = vmul.f32 %v2834_v58, %v2816_v27 }
 0x574   :  { %2563 = vmatpush3.bf16.msra.mxu1 %v717_v57  ;;  %2564 = vmatprep.mubr.msk.bf16.mxu1 %vm2886_vm1, %v2885_v0 }
 0x575   :  { %2576 = vmatprep.subr.bf16.mxu1 %v2885_v0  ;;  %v715_v61 = vpack.c.bf16 %v714_v59, %v713_v60  ;;  %v2771_v59 = vld [vmem:[%s3546_s13 + $0x8] sm:$0xff]   ;;  %v2772_v60 = vld [vmem:[%s3546_s13] sm:$0xff]  }
 0x57b   :  { %2565 = vmatmul.mubr.msk.bf16.vlgmr.msra.gmra.mxu1 %vm317_vm5, %v715_v61  ;;  %v2773_v61 = vld [vmem:[%s3547_s15 + $0x38] sm:$0xff]  }
 0x57c   :  { %2580 = vmatprep.mubr.msk.bf16.mxu1 %vm2886_vm1, %v2885_v0  ;;  %2577 = vmatpush3.bf16.msra.mxu1 %v2771_v59 }
 0x57d   :  { %2578 = vmatprep.subr.bf16.mxu1 %v2885_v0 }
 0x580   :  { %2579 = vmatpush3.bf16.msra.mxu1 %v2772_v60 }
 0x581   :  { %2604 = vmatprep.subr.bf16.mxu1 %v2885_v0 }
 0x61e   :  { %v381_v62 = vpop.f32.mrf.mxu1 }
 0x620   :  { %v2530_v63 = vpop.f32.mrf.mxu1 }
 0x621   :  { %v2775_v63 = vld [vmem:[%s3547_s15 + $0x28] sm:$0xff]  }
 0x622   :  { %v384_v1 = vpop.f32.mrf.mxu1 }
 0x624   :  { %v2531_v2 = vpop.f32.mrf.mxu1 }
 0x625   :  { %v2777_v2 = vld [vmem:[%s3547_s15 + $0x18] sm:$0xff]  }
 0x62b   :  { %v506_v3 = vpop.f32.mrf.mxu1 }
 0x62d   :  { %v2542_v4 = vpop.f32.mrf.mxu1 }
 0x62f   :  { %v509_v6 = vpop.f32.mrf.mxu1 }
 0x630   :  { %v2735_v7 = vpack.i.bf16 %v509_v6, %v506_v3 }
 0x631   :  { %v2543_v9 = vpop.f32.mrf.mxu1 }
 0x632   :  { %2736 = vrot.lane.b32.xlu1 %v2735_v7, %s3576_s10 }
 0x633   :  { %v631_v12 = vpop.f32.mrf.mxu1 }
 0x635   :  { %v2554_v13 = vpop.f32.mrf.mxu1 }
 0x637   :  { %v634_v15 = vpop.f32.mrf.mxu1 }
 0x638   :  { %v2740_v16 = vpack.i.bf16 %v634_v15, %v631_v12 }
 0x639   :  { %v2555_v18 = vpop.f32.mrf.mxu1 }
 0x63a   :  { %2741 = vrot.lane.b32.xlu0 %v2740_v16, %s3575_s27  ;;  %s3604_s27 = smov 40  }
 0x63b   :  { %v756_v19 = vpop.f32.mrf.mxu1 }
 0x63d   :  { %v2566_v20 = vpop.f32.mrf.mxu1 }
 0x63f   :  { %v759_v21 = vpop.f32.mrf.mxu1 }
 0x640   :  { %v2745_v22 = vpack.i.bf16 %v759_v21, %v756_v19  ;;  %v2330_v19 = vld [vmem:[%s3549_s8] ss:$0 sm:$0xff] }
 0x641   :  { %v2567_v23 = vpop.f32.mrf.mxu1 }
 0x642   :  { %2746 = vrot.lane.b32.xlu1 %v2745_v22, %s3574_s29 }
 0x6a4   :  { %v2737_v24 = vpop.permute.xlu1 %2736 }
 0x6a5   :  { %v2739_v26 = vunpack.i.h.bf16 %v2737_v24  ;;  %v2738_v27 = vunpack.i.l.bf16 %v2737_v24  ;;  %v2778_v24 = vld [vmem:[%s3547_s15 + $0x10] sm:$0xff]  }
 0x6a7   :  { %v788_v31 = vsel %vm265_vm4, %v384_v1, %v2739_v26  ;;  %v787_v32 = vsel %vm265_vm4, %v381_v62, %v2738_v27  ;;  %v2774_v62 = vld [vmem:[%s3547_s15 + $0x30] sm:$0xff]   ;;  %v2776_v1 = vld [vmem:[%s3547_s15 + $0x20] sm:$0xff]  }
 0x6a8   :  { %v2780_v26 = vld [vmem:[%s3547_s15] sm:$0xff]  }
 0x6a9   :  { %v2331_v27 = vld [vmem:[%s3550_s14] ss:$0 sm:$0xff] }
 0x6ac   :  { %v2742_v25 = vpop.permute.xlu0 %2741 }
 0x6ad   :  { %v2744_v28 = vunpack.i.h.bf16 %v2742_v25  ;;  %v2743_v29 = vunpack.i.l.bf16 %v2742_v25  ;;  %v2779_v25 = vld [vmem:[%s3547_s15 + $0x8] sm:$0xff]  }
 0x6af   :  { %v790_v35 = vsel %vm317_vm5, %v788_v31, %v2744_v28  ;;  %v789_v36 = vsel %vm317_vm5, %v787_v32, %v2743_v29 }
 0x6b4   :  { %v2747_v30 = vpop.permute.xlu1 %2746 }
 0x6b5   :  { %v2749_v33 = vunpack.i.h.bf16 %v2747_v30  ;;  %v2748_v34 = vunpack.i.l.bf16 %v2747_v30 }
 0x6b7   :  { %v793_v37 = vsel %vm791_vm6, %v790_v35, %v2749_v33  ;;  %v792_v38 = vsel %vm791_vm6, %v789_v36, %v2748_v34 }
 0x6b8   :  { %v798_v39 = vpack.c.bf16 %v793_v37, %v792_v38  ;;  %v2343_v38 = vld [vmem:[%s3551_s16] ss:$0 sm:$0xff] }
 0x6ba   :  { %2573 = vmatmul.mubr.msk.bf16.vlgmr.msra.gmra.mxu0 %vm149_vm3, %v798_v39 }
 0x6bb   :  { %2600 = vmatprep.mubr.msk.bf16.mxu0 %vm2886_vm1, %v2885_v0  ;;  %2585 = vmatpush3.bf16.msra.mxu0 %v2773_v61 }
 0x6bc   :  { %2586 = vmatprep.subr.bf16.mxu0 %v2885_v0 }
 0x6bf   :  { %2587 = vmatpush3.bf16.msra.mxu0 %v2774_v62 }
 0x6c0   :  { %2588 = vmatprep.subr.bf16.mxu0 %v2885_v0 }
 0x6c3   :  { %2589 = vmatpush3.bf16.msra.mxu0 %v2775_v63 }
 0x6c4   :  { %2590 = vmatprep.subr.bf16.mxu0 %v2885_v0 }
 0x6c7   :  { %2591 = vmatpush3.bf16.msra.mxu0 %v2776_v1 }
 0x6c8   :  { %2592 = vmatprep.subr.bf16.mxu0 %v2885_v0 }
 0x6cb   :  { %2593 = vmatpush3.bf16.msra.mxu0 %v2777_v2  ;;  %v2346_v2 = vld [vmem:[%s3592_s1 + $0x1] ss:$0 sm:$0xff] }
 0x6cc   :  { %2594 = vmatprep.subr.bf16.mxu0 %v2885_v0 }
 0x6cf   :  { %2595 = vmatpush3.bf16.msra.mxu0 %v2778_v24 }
 0x6d0   :  { %2596 = vmatprep.subr.bf16.mxu0 %v2885_v0 }
 0x6d3   :  { %2597 = vmatpush3.bf16.msra.mxu0 %v2779_v25 }
 0x6d4   :  { %2598 = vmatprep.subr.bf16.mxu0 %v2885_v0 }
 0x6d7   :  { %2599 = vmatpush3.bf16.msra.mxu0 %v2780_v26 }
 0x6d8   :  { %2630 = vmatprep.subr.bf16.mxu0 %v2885_v0 }
 0x77a   :  { %v855_v41 = vpop.f32.mrf.mxu0 }
 0x77b   :  { %v856_v55 = vadd.f32 %v2325_v40, %v855_v41 }
 0x77c   :  { %v2574_v42 = vpop.f32.mrf.mxu0 }
 0x77d   :  { %v3200_v43 = vadd.f32 %v856_v55, %v3046_v11 }
 0x77e   :  { %v858_v44 = vpop.f32.mrf.mxu0 }
 0x77f   :  { %v859_v45 = vadd.f32 %v2325_v40, %v858_v44  ;;  %v866_v46 = vsel %vm149_vm3, %v3200_v43, 0.0 }
 0x780   :  { %867 = vadd.xlane.f32.xlu0 %v866_v46  ;;  %v2575_v47 = vpop.f32.mrf.mxu0 }
 0x781   :  { %v3205_v48 = vadd.f32 %v859_v45, %v3053_v17 }
 0x783   :  { %v869_v49 = vsel %vm149_vm3, %v3205_v48, 0.0 }
 0x784   :  { %870 = vadd.xlane.f32.xlu1 %v869_v49 }
 0x809   :  { %v868_v50 = vpop.xlane.xlu0 %867 }
 0x80a   :  { %v872_v51 = vmul.f32 0.03125, %v868_v50 }
 0x80c   :  { %v874_v52 = vsub.f32 %v3200_v43, %v872_v51 }
 0x80d   :  { %v871_v11 = vpop.xlane.xlu1 %870 }
 0x80e   :  { %v873_v53 = vmul.f32 0.03125, %v871_v11  ;;  %v876_v54 = vmul.f32 %v874_v52, %v874_v52 }
 0x810   :  { %v875_v56 = vsub.f32 %v3205_v48, %v873_v53  ;;  %v878_v57 = vsel %vm149_vm3, %v876_v54, 0.0 }
 0x811   :  { %879 = vadd.xlane.f32.xlu0 %v878_v57  ;;  %v2781_v57 = vld [vmem:[%s3591_s24 + $0x18] sm:$0xff]  }
 0x812   :  { %v877_v58 = vmul.f32 %v875_v56, %v875_v56 }
 0x814   :  { %v881_v17 = vsel %vm149_vm3, %v877_v58, 0.0  ;;  %v2782_v58 = vld [vmem:[%s3591_s24 + $0x10] sm:$0xff]   ;;  %s3603_s24 = smov 56  }
 0x815   :  { %882 = vadd.xlane.f32.xlu0 %v881_v17 }
 0x89a   :  { %v880_v3 = vpop.xlane.xlu0 %879 }
 0x89b   :  { %v884_v4 = vmul.f32 0.03125, %v880_v3 }
 0x89d   :  { %v886_v6 = vadd.f32 1e-05, %v884_v4  ;;  %v2347_v4 = vld [vmem:[%s3593_s2 + $0x1] ss:$0 sm:$0xff]  ;;  %s3596_s2 = smov 120  }
 0x89e   :  { %v883_v7 = vpop.xlane.xlu0 %882 }
 0x89f   :  { %2835 = vrsqrt.f32 %v886_v6  ;;  %v885_v8 = vmul.f32 0.03125, %v883_v7 }
 0x8a1   :  { %v887_v9 = vadd.f32 1e-05, %v885_v8 }
 0x8a3   :  { %2837 = vrsqrt.f32 %v887_v9 }
 0x8ac   :  { %v2836_v12 = vpop.eup %2835 }
 0x8ad   :  { %v890_v13 = vmul.f32 %v2836_v12, %v874_v52 }
 0x8af   :  { %v898_v18 = vmul.f32 %v2329_v14, %v890_v13 }
 0x8b0   :  { %v2838_v15 = vpop.eup %2837 }
 0x8b1   :  { %v891_v16 = vmul.f32 %v2838_v15, %v875_v56  ;;  %v906_v21 = vadd.f32 %v2330_v19, %v898_v18 }
 0x8b3   :  { %v899_v20 = vmul.f32 %v2329_v14, %v891_v16  ;;  %v2353_v16 = vld [vmem:[%s3594_s9 + $0x1] ss:$0 sm:$0xff]  ;;  %s3598_s9 = smov 72  }
 0x8b5   :  { %v907_v22 = vadd.f32 %v2330_v19, %v899_v20 }
 0x8b7   :  { %v912_v23 = vpack.c.bf16 %v907_v22, %v906_v21 }
 0x8b9   :  { %2581 = vmatmul.mubr.msk.bf16.vlgmr.msra.gmra.mxu1 %vm149_vm3, %v912_v23 }
 0x8ba   :  { %2608 = vmatprep.mubr.msk.bf16.mxu1 %vm2886_vm1, %v2885_v0  ;;  %2605 = vmatpush3.bf16.msra.mxu1 %v2781_v57 }
 0x8bb   :  { %2606 = vmatprep.subr.bf16.mxu1 %v2885_v0 }
 0x8be   :  { %2607 = vmatpush3.bf16.msra.mxu1 %v2782_v58 }
 0x8bf   :  { %2612 = vmatprep.subr.bf16.mxu1 %v2885_v0 }
 0x979   :  { %v969_v28 = vpop.f32.mrf.mxu1 }
 0x97a   :  { %v970_v30 = vadd.f32 %v2331_v27, %v969_v28 }
 0x97b   :  { %v2582_v29 = vpop.f32.mrf.mxu1 }
 0x97c   :  { %v976_v34 = vmax.f32 %v970_v30, 0.0 }
 0x97d   :  { %v972_v31 = vpop.f32.mrf.mxu1 }
 0x97e   :  { %v973_v32 = vadd.f32 %v2331_v27, %v972_v31 }
 0x97f   :  { %v2583_v33 = vpop.f32.mrf.mxu1 }
 0x980   :  { %v977_v35 = vmax.f32 %v973_v32, 0.0 }
 0x982   :  { %v994_v36 = vpack.c.bf16 %v977_v35, %v976_v34 }
 0x984   :  { %2601 = vmatmul.mubr.bf16.vlgmr.msra.gmra.mxu0 %v994_v36 }
 0x985   :  { %2632 = vmatprep.mubr.msk.bf16.mxu0 %vm2886_vm1, %v2885_v0 }
 0xa44   :  { %v1077_v37 = vpop.f32.mrf.mxu0 }
 0xa45   :  { %v1084_v39 = vadd.f32 %v1077_v37, %v3200_v43 }
 0xa46   :  { %v2602_v40 = vpop.f32.mrf.mxu0 }
 0xa47   :  { %v3271_v41 = vadd.f32 %v2343_v38, %v1084_v39 }
 0xa48   :  { %v1080_v55 = vpop.f32.mrf.mxu0 }
 0xa49   :  { %v1085_v42 = vadd.f32 %v1080_v55, %v3205_v48  ;;  %v1099_v44 = vsel %vm149_vm3, %v3271_v41, 0.0 }
 0xa4a   :  { %1100 = vadd.xlane.f32.xlu0 %v1099_v44  ;;  %v2603_v45 = vpop.f32.mrf.mxu0 }
 0xa4b   :  { %v3276_v46 = vadd.f32 %v2343_v38, %v1085_v42 }
 0xa4d   :  { %v1102_v47 = vsel %vm149_vm3, %v3276_v46, 0.0 }
 0xa4e   :  { %1103 = vadd.xlane.f32.xlu1 %v1102_v47 }
 0xad3   :  { %v1101_v49 = vpop.xlane.xlu0 %1100 }
 0xad4   :  { %v1105_v50 = vmul.f32 0.03125, %v1101_v49 }
 0xad6   :  { %v1107_v43 = vsub.f32 %v3271_v41, %v1105_v50 }
 0xad7   :  { %v1104_v51 = vpop.xlane.xlu1 %1103 }
 0xad8   :  { %v1106_v52 = vmul.f32 0.03125, %v1104_v51  ;;  %v1109_v11 = vmul.f32 %v1107_v43, %v1107_v43 }
 0xada   :  { %v1108_v48 = vsub.f32 %v3276_v46, %v1106_v52  ;;  %v1111_v53 = vsel %vm149_vm3, %v1109_v11, 0.0 }
 0xadb   :  { %1112 = vadd.xlane.f32.xlu0 %v1111_v53 }
 0xadc   :  { %v1110_v54 = vmul.f32 %v1108_v48, %v1108_v48 }
 0xade   :  { %v1114_v56 = vsel %vm149_vm3, %v1110_v54, 0.0 }
 0xadf   :  { %1115 = vadd.xlane.f32.xlu1 %v1114_v56 }
 0xb64   :  { %v1113_v17 = vpop.xlane.xlu0 %1112 }
 0xb65   :  { %v1117_v59 = vmul.f32 0.03125, %v1113_v17 }
 0xb67   :  { %v1119_v60 = vadd.f32 1e-05, %v1117_v59 }
 0xb68   :  { %v1116_v61 = vpop.xlane.xlu1 %1115 }
 0xb69   :  { %2839 = vrsqrt.f32 %v1119_v60  ;;  %v1118_v62 = vmul.f32 0.03125, %v1116_v61 }
 0xb6b   :  { %v1120_v63 = vadd.f32 1e-05, %v1118_v62 }
 0xb6d   :  { %2841 = vrsqrt.f32 %v1120_v63 }
 0xb76   :  { %v2840_v1 = vpop.eup %2839 }
 0xb77   :  { %v1123_v3 = vmul.f32 %v2840_v1, %v1107_v43 }
 0xb79   :  { %v1131_v6 = vmul.f32 %v2346_v2, %v1123_v3 }
 0xb7a   :  { %v2842_v7 = vpop.eup %2841 }
 0xb7b   :  { %v1124_v8 = vmul.f32 %v2842_v7, %v1108_v48  ;;  %v1139_v9 = vadd.f32 %v2347_v4, %v1131_v6 }
 0xb7d   :  { %v1132_v12 = vmul.f32 %v2346_v2, %v1124_v8 }
 0xb7f   :  { %v1140_v13 = vadd.f32 %v2347_v4, %v1132_v12 }
 0xb81   :  { %v1146_v14 = vpack.c.bf16 %v1140_v13, %v1139_v9 }
 0xb83   :  { %2609 = vmatmul.mubr.msk.bf16.vlgmr.msra.gmra.mxu1 %vm149_vm3, %v1146_v14 }
 0xb84   :  { %2614 = vmatprep.mubr.msk.bf16.mxu1 %vm2886_vm1, %v2885_v0 }
 0xc43   :  { %v1204_v15 = vpop.f32.mrf.mxu1 }
 0xc44   :  { %v1205_v20 = vadd.f32 %v2353_v16, %v1204_v15 }
 0xc45   :  { %v2610_v18 = vpop.f32.mrf.mxu1 }
 0xc47   :  { %v1207_v19 = vpop.f32.mrf.mxu1 }
 0xc48   :  { %v1208_v21 = vadd.f32 %v2353_v16, %v1207_v19 }
 0xc49   :  { %v2611_v22 = vpop.f32.mrf.mxu1 }
 0xc4a   :  { %v3304_v23 = vpack.c.bf16 %v1208_v21, %v1205_v20  ;;  %v2883_v21 = vld [vmem:[%s3595_s28] sm:$0xff] }
 0xc4c   :  { %1213 = vrot.lane.b32.xlu0 %v3304_v23, %s2888_s5  ;;  %s3600_s5 = smov 112  }
 0xc50   :  { %1338 = vrot.lane.b32.xlu0 %v3304_v23, %s2887_s4  ;;  %s3599_s4 = smov 64  }
 0xc54   :  { %1336 = vrot.lane.b32.xlu0 %v3304_v23, %s3596_s2  ;;  %s3605_s2 = smov 8  }
 0xc58   :  { %1463 = vrot.lane.b32.xlu0 %v3304_v23, %s3597_s26  ;;  %s3606_s26 = smov 16  }
 0xc5c   :  { %1588 = vrot.lane.b32.xlu0 %v3304_v23, %s3598_s9 }
 0xcbe   :  { %v1214_v24 = vpop.permute.xlu0 %1213 }
 0xcbf   :  { %v1219_v25 = vsel %vm265_vm4, %v1214_v24, 0 }
 0xcc0   :  { %2613 = vmatpush3.bf16.xpose.msra.mxu1 %v1219_v25 }
 0xcc1   :  { %2618 = vmatprep.subr.bf16.mxu1 %v2885_v0 }
 0xcc2   :  { %v1339_v52 = vpop.permute.xlu0 %1338 }
 0xcc3   :  { %v1344_v57 = vsel %vm265_vm4, %v1339_v52, 0 }
 0xcc6   :  { %v1337_v56 = vpop.permute.xlu0 %1336 }
 0xcc7   :  { %2615 = vmatmul.mubr.msk.bf16.vlgmr.msra.gmra.mxu1 %vm265_vm4, %v3304_v23 }
 0xcc8   :  { %2620 = vmatprep.mubr.msk.bf16.mxu1 %vm2886_vm1, %v2885_v0 }
 0xcca   :  { %v1464_v58 = vpop.permute.xlu0 %1463 }
 0xccb   :  { %v1469_v17 = vsel %vm265_vm4, %v1464_v58, 0 }
 0xcce   :  { %v1589_v59 = vpop.permute.xlu0 %1588 }
 0xccf   :  { %v1594_v61 = vsel %vm265_vm4, %v1589_v59, 0 }
 0xd87   :  { %v1255_v26 = vpop.f32.mrf.mxu1 }
 0xd88   :  { %v1262_v27 = vmul.f32 0.35355338, %v1255_v26 }
 0xd89   :  { %v2616_v28 = vpop.f32.mrf.mxu1 }
 0xd8a   :  { %v1264_v29 = vadd.f32 %v1262_v27, %v3121_v5 }
 0xd8b   :  { %v1258_v30 = vpop.f32.mrf.mxu1 }
 0xd8c   :  { %v1263_v31 = vmul.f32 0.35355338, %v1258_v30  ;;  %v1266_v32 = vsel %vm317_vm5, %v1264_v29, -inf }
 0xd8d   :  { %1267 = vmax.xlane.f32.xlu1 %v1266_v32  ;;  %v2617_v33 = vpop.f32.mrf.mxu1 }
 0xd8e   :  { %v1265_v34 = vadd.f32 %v1263_v31, %v3127_v10 }
 0xd90   :  { %v1269_v35 = vsel %vm317_vm5, %v1265_v34, -inf }
 0xd91   :  { %1270 = vmax.xlane.f32.xlu1 %v1269_v35 }
 0xe16   :  { %v1268_v36 = vpop.xlane.xlu1 %1267 }
 0xe17   :  { %v1272_v37 = vsub.f32 %v1264_v29, %v1268_v36 }
 0xe19   :  { %v1274_v38 = vmul.f32 1.442695, %v1272_v37 }
 0xe1a   :  { %v1271_v39 = vpop.xlane.xlu1 %1270 }
 0xe1b   :  { %2843 = vpow2.f32 %v1274_v38  ;;  %v1273_v40 = vsub.f32 %v1265_v34, %v1271_v39 }
 0xe1d   :  { %v1276_v55 = vmul.f32 1.442695, %v1273_v40 }
 0xe1f   :  { %2845 = vpow2.f32 %v1276_v55 }
 0xe28   :  { %v2844_v42 = vpop.eup %2843 }
 0xe29   :  { %v1278_v44 = vsel %vm317_vm5, %v2844_v42, 0.0 }
 0xe2a   :  { %1279 = vadd.xlane.f32.xlu1 %v1278_v44 }
 0xe2c   :  { %v2846_v45 = vpop.eup %2845 }
 0xe2d   :  { %v1281_v47 = vsel %vm317_vm5, %v2846_v45, 0.0 }
 0xe2e   :  { %1282 = vadd.xlane.f32.xlu1 %v1281_v47 }
 0xe3f   :  { %1289 = vrot.lane.b32.xlu1 %v3304_v23, %s3599_s4 }
 0xe43   :  { %1461 = vrot.lane.b32.xlu1 %v3304_v23, %s3600_s5  ;;  %s3607_s5 = smov 24  }
 0xe47   :  { %1586 = vrot.lane.b32.xlu1 %v3304_v23, %s3601_s30 }
 0xeb3   :  { %v1280_v49 = vpop.xlane.xlu1 %1279 }
 0xeb4   :  { %2847 = vrcp.f32 %v1280_v49 }
 0xeb7   :  { %v1283_v50 = vpop.xlane.xlu1 %1282 }
 0xeb8   :  { %2849 = vrcp.f32 %v1283_v50 }
 0xebb   :  { %v1290_v43 = vpop.permute.xlu1 %1289 }
 0xebc   :  { %2619 = vmatpush3.bf16.msra.mxu1 %v1290_v43 }
 0xebd   :  { %2624 = vmatprep.subr.bf16.mxu1 %v2885_v0 }
 0xebf   :  { %v1462_v60 = vpop.permute.xlu1 %1461 }
 0xec1   :  { %v2848_v51 = vpop.eup %2847 }
 0xec2   :  { %v1286_v48 = vmul.f32 %v2848_v51, %v2844_v42 }
 0xec3   :  { %v1587_v62 = vpop.permute.xlu1 %1586 }
 0xec5   :  { %v2850_v11 = vpop.eup %2849 }
 0xec6   :  { %v1287_v53 = vmul.f32 %v2850_v11, %v2846_v45 }
 0xec8   :  { %v1288_v54 = vpack.c.bf16 %v1287_v53, %v1286_v48 }
 0xeca   :  { %2621 = vmatmul.mubr.msk.bf16.vlgmr.msra.gmra.mxu1 %vm317_vm5, %v1288_v54 }
 0xecb   :  { %2625 = vmatpush3.bf16.xpose.msra.mxu1 %v1344_v57  ;;  %2626 = vmatprep.mubr.msk.bf16.mxu1 %vm2886_vm1, %v2885_v0 }
 0xecc   :  { %2636 = vmatprep.subr.bf16.mxu1 %v2885_v0 }
 0xed2   :  { %2627 = vmatmul.mubr.msk.bf16.vlgmr.msra.gmra.mxu1 %vm265_vm4, %v1337_v56 }
 0xed3   :  { %2637 = vmatpush3.bf16.xpose.msra.mxu1 %v1469_v17  ;;  %2638 = vmatprep.mubr.msk.bf16.mxu1 %vm2886_vm1, %v2885_v0 }
 0xed4   :  { %2648 = vmatprep.subr.bf16.mxu1 %v2885_v0 }
 0xeda   :  { %2639 = vmatmul.mubr.msk.bf16.vlgmr.msra.gmra.mxu1 %vm265_vm4, %v1462_v60 }
 0xedb   :  { %2649 = vmatpush3.bf16.xpose.msra.mxu1 %v1594_v61  ;;  %2650 = vmatprep.mubr.msk.bf16.mxu1 %vm2886_vm1, %v2885_v0 }
 0xedc   :  { %2660 = vmatprep.subr.bf16.mxu1 %v2885_v0 }
 0xee2   :  { %2651 = vmatmul.mubr.msk.bf16.vlgmr.msra.gmra.mxu1 %vm265_vm4, %v1587_v62 }
 0xee3   :  { %2664 = vmatprep.mubr.msk.bf16.mxu1 %vm2886_vm1, %v2885_v0 }
 0xf8a   :  { %v3353_v63 = vpop.f32.mrf.mxu1 }
 0xf8c   :  { %v2622_v1 = vpop.f32.mrf.mxu1 }
 0xf8e   :  { %v3355_v2 = vpop.f32.mrf.mxu1 }
 0xf90   :  { %v2623_v3 = vpop.f32.mrf.mxu1 }
 0xf92   :  { %v1380_v4 = vpop.f32.mrf.mxu1 }
 0xf93   :  { %v1387_v6 = vmul.f32 0.35355338, %v1380_v4 }
 0xf94   :  { %v2628_v7 = vpop.f32.mrf.mxu1 }
 0xf95   :  { %v1389_v8 = vadd.f32 %v1387_v6, %v3121_v5 }
 0xf96   :  { %v1383_v9 = vpop.f32.mrf.mxu1 }
 0xf97   :  { %v1388_v12 = vmul.f32 0.35355338, %v1383_v9  ;;  %v1391_v13 = vsel %vm317_vm5, %v1389_v8, -inf }
 0xf98   :  { %1392 = vmax.xlane.f32.xlu0 %v1391_v13  ;;  %v2629_v14 = vpop.f32.mrf.mxu1 }
 0xf99   :  { %v1390_v15 = vadd.f32 %v1388_v12, %v3127_v10  ;;  %v2884_v10 = vld [vmem:[%s3595_s28 + $0x8] sm:$0xff]  ;;  %s3602_s28 = smov 48  }
 0xf9a   :  { %v1505_v16 = vpop.f32.mrf.mxu1 }
 0xf9b   :  { %v1512_v18 = vmul.f32 0.35355338, %v1505_v16  ;;  %v1394_v19 = vsel %vm317_vm5, %v1390_v15, -inf }
 0xf9c   :  { %1395 = vmax.xlane.f32.xlu1 %v1394_v19  ;;  %v2640_v20 = vpop.f32.mrf.mxu1 }
 0xf9d   :  { %v1514_v22 = vadd.f32 %v2883_v21, %v1512_v18 }
 0xf9e   :  { %v1508_v5 = vpop.f32.mrf.mxu1 }
 0xf9f   :  { %v1513_v24 = vmul.f32 0.35355338, %v1508_v5  ;;  %v1516_v25 = vsel %vm317_vm5, %v1514_v22, -inf }
 0xfa0   :  { %1517 = vmax.xlane.f32.xlu0 %v1516_v25  ;;  %v2641_v26 = vpop.f32.mrf.mxu1 }
 0xfa1   :  { %v1515_v27 = vadd.f32 %v2884_v10, %v1513_v24 }
 0xfa2   :  { %v1630_v28 = vpop.f32.mrf.mxu1 }
 0xfa3   :  { %v1637_v29 = vmul.f32 0.35355338, %v1630_v28  ;;  %v1519_v30 = vsel %vm317_vm5, %v1515_v27, -inf }
 0xfa4   :  { %1520 = vmax.xlane.f32.xlu0 %v1519_v30  ;;  %v2652_v31 = vpop.f32.mrf.mxu1 }
 0xfa5   :  { %v1639_v32 = vadd.f32 %v2883_v21, %v1637_v29 }
 0xfa6   :  { %v1633_v33 = vpop.f32.mrf.mxu1 }
 0xfa7   :  { %v1638_v34 = vmul.f32 0.35355338, %v1633_v33  ;;  %v1641_v35 = vsel %vm317_vm5, %v1639_v32, -inf }
 0xfa8   :  { %1642 = vmax.xlane.f32.xlu0 %v1641_v35  ;;  %v2653_v36 = vpop.f32.mrf.mxu1 }
 0xfa9   :  { %v1640_v37 = vadd.f32 %v2884_v10, %v1638_v34 }
 0xfab   :  { %v1644_v38 = vsel %vm317_vm5, %v1640_v37, -inf }
 0xfac   :  { %1645 = vmax.xlane.f32.xlu1 %v1644_v38 }
0x1021   :  { %v1393_v39 = vpop.xlane.xlu0 %1392 }
0x1022   :  { %v1397_v40 = vsub.f32 %v1389_v8, %v1393_v39 }
0x1024   :  { %v1399_v55 = vmul.f32 1.442695, %v1397_v40 }
0x1025   :  { %v1396_v42 = vpop.xlane.xlu1 %1395 }
0x1026   :  { %2851 = vpow2.f32 %v1399_v55  ;;  %v1398_v44 = vsub.f32 %v1390_v15, %v1396_v42 }
0x1028   :  { %v1401_v45 = vmul.f32 1.442695, %v1398_v44 }
0x1029   :  { %v1518_v47 = vpop.xlane.xlu0 %1517 }
0x102a   :  { %2853 = vpow2.f32 %v1401_v45  ;;  %v1522_v49 = vsub.f32 %v1514_v22, %v1518_v47  ;;  %v2784_v47 = vld [vmem:[%s3544_s11 + $0x10] sm:$0xff]  }
0x102c   :  { %v1524_v50 = vmul.f32 1.442695, %v1522_v49 }
0x102d   :  { %v1521_v43 = vpop.xlane.xlu0 %1520 }
0x102e   :  { %2855 = vpow2.f32 %v1524_v50  ;;  %v1523_v51 = vsub.f32 %v1515_v27, %v1521_v43 }
0x1030   :  { %v1526_v52 = vmul.f32 1.442695, %v1523_v51 }
0x1031   :  { %v1643_v11 = vpop.xlane.xlu0 %1642 }
0x1032   :  { %2857 = vpow2.f32 %v1526_v52  ;;  %v1647_v48 = vsub.f32 %v1639_v32, %v1643_v11 }
0x1033   :  { %v2852_v53 = vpop.eup %2851 }
0x1034   :  { %v1649_v54 = vmul.f32 1.442695, %v1647_v48  ;;  %v1403_v56 = vsel %vm317_vm5, %v2852_v53, 0.0 }
0x1035   :  { %1404 = vadd.xlane.f32.xlu0 %v1403_v56  ;;  %v1646_v3 = vpop.xlane.xlu1 %1645 }
0x1036   :  { %2859 = vpow2.f32 %v1649_v54  ;;  %v1648_v4 = vsub.f32 %v1640_v37, %v1646_v3  ;;  %v2783_v37 = vld [vmem:[%s3544_s11 + $0x18] sm:$0xff]  }
0x1037   :  { %v2854_v57 = vpop.eup %2853  ;;  %2661 = vmatpush3.bf16.msra.mxu1 %v2783_v37 }
0x1038   :  { %v1406_v58 = vsel %vm317_vm5, %v2854_v57, 0.0  ;;  %v1651_v6 = vmul.f32 1.442695, %v1648_v4  ;;  %2662 = vmatprep.subr.bf16.mxu1 %v2885_v0 }
0x1039   :  { %1407 = vadd.xlane.f32.xlu1 %v1406_v58 }
0x103a   :  { %2861 = vpow2.f32 %v1651_v6 }
0x103b   :  { %v2856_v17 = vpop.eup %2855  ;;  %2663 = vmatpush3.bf16.msra.mxu1 %v2784_v47 }
0x103c   :  { %v1528_v59 = vsel %vm317_vm5, %v2856_v17, 0.0  ;;  %2676 = vmatprep.subr.bf16.mxu1 %v2885_v0 }
0x103d   :  { %1529 = vadd.xlane.f32.xlu0 %v1528_v59 }
0x103f   :  { %v2858_v60 = vpop.eup %2857 }
0x1040   :  { %v1531_v61 = vsel %vm317_vm5, %v2858_v60, 0.0 }
0x1041   :  { %1532 = vadd.xlane.f32.xlu1 %v1531_v61 }
0x1043   :  { %v2860_v62 = vpop.eup %2859 }
0x1044   :  { %v1653_v1 = vsel %vm317_vm5, %v2860_v62, 0.0 }
0x1045   :  { %1654 = vadd.xlane.f32.xlu0 %v1653_v1 }
0x1047   :  { %v2862_v7 = vpop.eup %2861 }
0x1048   :  { %v1656_v8 = vsel %vm317_vm5, %v2862_v7, 0.0 }
0x1052   :  { %1539 = vrot.lane.b32.xlu1 %v3304_v23, %s3602_s28 }
0x105b   :  { %1414 = vrot.lane.b32.xlu0 %v3304_v23, %s3603_s24 }
0x1076   :  { %1657 = vadd.xlane.f32.xlu1 %v1656_v8 }
0x1087   :  { %1664 = vrot.lane.b32.xlu1 %v3304_v23, %s3604_s27 }
0x10be   :  { %v1405_v9 = vpop.xlane.xlu0 %1404 }
0x10bf   :  { %2863 = vrcp.f32 %v1405_v9 }
0x10c2   :  { %v1408_v12 = vpop.xlane.xlu1 %1407 }
0x10c3   :  { %2865 = vrcp.f32 %v1408_v12 }
0x10c6   :  { %v1530_v13 = vpop.xlane.xlu0 %1529 }
0x10c7   :  { %2867 = vrcp.f32 %v1530_v13 }
0x10ca   :  { %v1533_v14 = vpop.xlane.xlu1 %1532 }
0x10cb   :  { %2869 = vrcp.f32 %v1533_v14 }
0x10cc   :  { %v2864_v15 = vpop.eup %2863 }
0x10cd   :  { %v1411_v19 = vmul.f32 %v2864_v15, %v2852_v53 }
0x10ce   :  { %v1655_v16 = vpop.xlane.xlu0 %1654  ;;  %v1540_v23 = vpop.permute.xlu1 %1539 }
0x10cf   :  { %2871 = vrcp.f32 %v1655_v16 }
0x10d0   :  { %v2866_v18 = vpop.eup %2865 }
0x10d1   :  { %v1412_v20 = vmul.f32 %v2866_v18, %v2854_v57 }
0x10d2   :  { %v1415_v21 = vpop.permute.xlu0 %1414 }
0x10d3   :  { %2631 = vmatpush3.bf16.msra.mxu0 %v1415_v21  ;;  %v1413_v22 = vpack.c.bf16 %v1412_v20, %v1411_v19 }
0x10d4   :  { %2642 = vmatprep.subr.bf16.mxu0 %v2885_v0  ;;  %v2868_v5 = vpop.eup %2867 }
0x10d5   :  { %v1536_v25 = vmul.f32 %v2868_v5, %v2856_v17 }
0x10d6   :  { %2633 = vmatmul.mubr.msk.bf16.vlgmr.msra.gmra.mxu0 %vm317_vm5, %v1413_v22 }
0x10d7   :  { %2643 = vmatpush3.bf16.msra.mxu0 %v1540_v23  ;;  %2644 = vmatprep.mubr.msk.bf16.mxu0 %vm2886_vm1, %v2885_v0 }
0x10d8   :  { %v2870_v24 = vpop.eup %2869  ;;  %2654 = vmatprep.subr.bf16.mxu0 %v2885_v0 }
0x10d9   :  { %v1537_v26 = vmul.f32 %v2870_v24, %v2858_v60 }
0x10db   :  { %v1538_v10 = vpack.c.bf16 %v1537_v26, %v1536_v25  ;;  %v2785_v26 = vld [vmem:[%s3546_s13 + $0x18] sm:$0xff]  }
0x10dc   :  { %v2872_v29 = vpop.eup %2871 }
0x10dd   :  { %v1661_v31 = vmul.f32 %v2872_v29, %v2860_v62  ;;  %v2789_v29 = vld [vmem:[%s3547_s15 + $0x68] sm:$0xff]  }
0x10de   :  { %2645 = vmatmul.mubr.msk.bf16.vlgmr.msra.gmra.mxu0 %vm317_vm5, %v1538_v10  ;;  %v2786_v10 = vld [vmem:[%s3546_s13 + $0x10] sm:$0xff]  }
0x10df   :  { %2656 = vmatprep.mubr.msk.bf16.mxu0 %vm2886_vm1, %v2885_v0 }
0x10ff   :  { %v1658_v27 = vpop.xlane.xlu1 %1657 }
0x1100   :  { %2873 = vrcp.f32 %v1658_v27  ;;  %v2787_v27 = vld [vmem:[%s3547_s15 + $0x78] sm:$0xff]  }
0x1103   :  { %v1665_v28 = vpop.permute.xlu1 %1664 }
0x1104   :  { %2655 = vmatpush3.bf16.msra.mxu0 %v1665_v28  ;;  %v2788_v28 = vld [vmem:[%s3547_s15 + $0x70] sm:$0xff]  }
0x1105   :  { %2668 = vmatprep.subr.bf16.mxu0 %v2885_v0 }
0x110d   :  { %v2874_v30 = vpop.eup %2873 }
0x110e   :  { %v1662_v32 = vmul.f32 %v2874_v30, %v2862_v7  ;;  %v2790_v30 = vld [vmem:[%s3547_s15 + $0x60] sm:$0xff]  }
0x1110   :  { %v1663_v33 = vpack.c.bf16 %v1662_v32, %v1661_v31  ;;  %v2791_v31 = vld [vmem:[%s3547_s15 + $0x58] sm:$0xff]  }
0x1112   :  { %2657 = vmatmul.mubr.msk.bf16.vlgmr.msra.gmra.mxu0 %vm317_vm5, %v1663_v33 }
0x1113   :  { %2672 = vmatprep.mubr.msk.bf16.mxu0 %vm2886_vm1, %v2885_v0  ;;  %2669 = vmatpush3.bf16.msra.mxu0 %v2785_v26 }
0x1114   :  { %2670 = vmatprep.subr.bf16.mxu0 %v2885_v0 }
0x1117   :  { %2671 = vmatpush3.bf16.msra.mxu0 %v2786_v10 }
0x1118   :  { %2696 = vmatprep.subr.mxu0 %v2885_v0 }
0x1196   :  { %v1454_v34 = vpop.f32.mrf.mxu0 }
0x1198   :  { %v2634_v35 = vpop.f32.mrf.mxu0 }
0x119a   :  { %v1457_v36 = vpop.f32.mrf.mxu0 }
0x119b   :  { %v2750_v38 = vpack.i.bf16 %v1457_v36, %v1454_v34 }
0x119c   :  { %v2635_v39 = vpop.f32.mrf.mxu0 }
0x119d   :  { %2751 = vrot.lane.b32.xlu1 %v2750_v38, %s3605_s2 }
0x119e   :  { %v1579_v40 = vpop.f32.mrf.mxu0 }
0x11a0   :  { %v2646_v55 = vpop.f32.mrf.mxu0 }
0x11a2   :  { %v1582_v42 = vpop.f32.mrf.mxu0 }
0x11a3   :  { %v2755_v44 = vpack.i.bf16 %v1582_v42, %v1579_v40  ;;  %v2376_v40 = vld [vmem:[%s3548_s7 + $0x1] ss:$0 sm:$0xff] }
0x11a4   :  { %v2647_v45 = vpop.f32.mrf.mxu0 }
0x11a5   :  { %2756 = vrot.lane.b32.xlu0 %v2755_v44, %s3606_s26  ;;  %v2377_v45 = vld [vmem:[%s3549_s8 + $0x1] ss:$0 sm:$0xff] }
0x11d2   :  { %v1704_v49 = vpop.f32.mrf.mxu0 }
0x11d4   :  { %v2658_v50 = vpop.f32.mrf.mxu0 }
0x11d6   :  { %v1707_v43 = vpop.f32.mrf.mxu0 }
0x11d7   :  { %v2760_v51 = vpack.i.bf16 %v1707_v43, %v1704_v49 }
0x11d8   :  { %v2659_v52 = vpop.f32.mrf.mxu0 }
0x11d9   :  { %2761 = vrot.lane.b32.xlu1 %v2760_v51, %s3607_s5  ;;  %v2792_v51 = vld [vmem:[%s3547_s15 + $0x50] sm:$0xff]   ;;  %v2793_v52 = vld [vmem:[%s3547_s15 + $0x48] sm:$0xff]  }
0x120f   :  { %v2752_v11 = vpop.permute.xlu1 %2751 }
0x1210   :  { %v2754_v53 = vunpack.i.h.bf16 %v2752_v11  ;;  %v2753_v54 = vunpack.i.l.bf16 %v2752_v11  ;;  %v2794_v11 = vld [vmem:[%s3547_s15 + $0x40] sm:$0xff]  }
0x1212   :  { %v1736_v17 = vsel %vm265_vm4, %v3355_v2, %v2754_v53  ;;  %v1735_v59 = vsel %vm265_vm4, %v3353_v63, %v2753_v54  ;;  %v2370_v63 = vld [vmem:[%s3545_s12 + $0x1] ss:$0 sm:$0xff] }
0x1217   :  { %v2757_v48 = vpop.permute.xlu0 %2756 }
0x1218   :  { %v2759_v56 = vunpack.i.h.bf16 %v2757_v48  ;;  %v2758_v57 = vunpack.i.l.bf16 %v2757_v48  ;;  %v2383_v48 = vld [vmem:[%s3550_s14 + $0x1] ss:$0 sm:$0xff] }
0x121a   :  { %v1738_v62 = vsel %vm317_vm5, %v1736_v17, %v2759_v56  ;;  %v1737_v1 = vsel %vm317_vm5, %v1735_v59, %v2758_v57 }
0x124b   :  { %v2762_v58 = vpop.permute.xlu1 %2761 }
0x124c   :  { %v2764_v60 = vunpack.i.h.bf16 %v2762_v58  ;;  %v2763_v61 = vunpack.i.l.bf16 %v2762_v58 }
0x124e   :  { %v1740_v3 = vsel %vm791_vm6, %v1738_v62, %v2764_v60  ;;  %v1739_v4 = vsel %vm791_vm6, %v1737_v1, %v2763_v61  ;;  %v2412_v1 = vld [vmem:[%s3551_s16 + $0x1] ss:$0 sm:$0xff] }
0x124f   :  { %v1746_v6 = vpack.c.bf16 %v1740_v3, %v1739_v4 }
0x1251   :  { %2665 = vmatmul.mubr.msk.bf16.vlgmr.msra.gmra.mxu1 %vm149_vm3, %v1746_v6 }
0x1252   :  { %2692 = vmatprep.mubr.msk.bf16.mxu1 %vm2886_vm1, %v2885_v0  ;;  %2677 = vmatpush3.bf16.msra.mxu1 %v2787_v27 }
0x1253   :  { %2678 = vmatprep.subr.bf16.mxu1 %v2885_v0 }
0x1256   :  { %2679 = vmatpush3.bf16.msra.mxu1 %v2788_v28 }
0x1257   :  { %2680 = vmatprep.subr.bf16.mxu1 %v2885_v0 }
0x125a   :  { %2681 = vmatpush3.bf16.msra.mxu1 %v2789_v29  ;;  %v2413_v29 = vld [vmem:[%s3553_s17] ss:$0 sm:$0xff] }
0x125b   :  { %2682 = vmatprep.subr.bf16.mxu1 %v2885_v0 }
0x125e   :  { %2683 = vmatpush3.bf16.msra.mxu1 %v2790_v30 }
0x125f   :  { %2684 = vmatprep.subr.bf16.mxu1 %v2885_v0 }
0x1262   :  { %2685 = vmatpush3.bf16.msra.mxu1 %v2791_v31 }
0x1263   :  { %2686 = vmatprep.subr.bf16.mxu1 %v2885_v0 }
0x1266   :  { %2687 = vmatpush3.bf16.msra.mxu1 %v2792_v51 }
0x1267   :  { %2688 = vmatprep.subr.bf16.mxu1 %v2885_v0 }
0x126a   :  { %2689 = vmatpush3.bf16.msra.mxu1 %v2793_v52 }
0x126b   :  { %2690 = vmatprep.subr.bf16.mxu1 %v2885_v0 }
0x126e   :  { %2691 = vmatpush3.bf16.msra.mxu1 %v2794_v11 }
0x1311   :  { %v1804_v2 = vpop.f32.mrf.mxu1 }
0x1312   :  { %v1805_v7 = vadd.f32 %v2370_v63, %v1804_v2 }
0x1313   :  { %v2666_v8 = vpop.f32.mrf.mxu1 }
0x1314   :  { %v3421_v9 = vadd.f32 %v1805_v7, %v3271_v41 }
0x1315   :  { %v1807_v12 = vpop.f32.mrf.mxu1 }
0x1316   :  { %v1808_v13 = vadd.f32 %v2370_v63, %v1807_v12  ;;  %v1817_v14 = vsel %vm149_vm3, %v3421_v9, 0.0 }
0x1317   :  { %1818 = vadd.xlane.f32.xlu0 %v1817_v14  ;;  %v2667_v15 = vpop.f32.mrf.mxu1 }
0x1318   :  { %v3426_v16 = vadd.f32 %v1808_v13, %v3276_v46 }
0x131a   :  { %v1820_v18 = vsel %vm149_vm3, %v3426_v16, 0.0 }
0x131b   :  { %1821 = vadd.xlane.f32.xlu1 %v1820_v18 }
0x13a0   :  { %v1819_v19 = vpop.xlane.xlu0 %1818 }
0x13a1   :  { %v1823_v20 = vmul.f32 0.03125, %v1819_v19 }
0x13a3   :  { %v1825_v21 = vsub.f32 %v3421_v9, %v1823_v20 }
0x13a4   :  { %v1822_v41 = vpop.xlane.xlu1 %1821 }
0x13a5   :  { %v1824_v22 = vmul.f32 0.03125, %v1822_v41  ;;  %v1827_v5 = vmul.f32 %v1825_v21, %v1825_v21 }
0x13a7   :  { %v1826_v23 = vsub.f32 %v3426_v16, %v1824_v22  ;;  %v1829_v24 = vsel %vm149_vm3, %v1827_v5, 0.0 }
0x13a8   :  { %1830 = vadd.xlane.f32.xlu0 %v1829_v24 }
0x13a9   :  { %v1828_v25 = vmul.f32 %v1826_v23, %v1826_v23 }
0x13ab   :  { %v1832_v46 = vsel %vm149_vm3, %v1828_v25, 0.0 }
0x13ac   :  { %1833 = vadd.xlane.f32.xlu0 %v1832_v46 }
0x1431   :  { %v1831_v32 = vpop.xlane.xlu0 %1830 }
0x1432   :  { %v1835_v33 = vmul.f32 0.03125, %v1831_v32 }
0x1434   :  { %v1837_v34 = vadd.f32 1e-05, %v1835_v33  ;;  %v2414_v33 = vld [vmem:[%s3554_s18] ss:$0 sm:$0xff] }
0x1435   :  { %v1834_v35 = vpop.xlane.xlu0 %1833 }
0x1436   :  { %2875 = vrsqrt.f32 %v1837_v34  ;;  %v1836_v36 = vmul.f32 0.03125, %v1834_v35 }
0x1438   :  { %v1838_v37 = vadd.f32 1e-05, %v1836_v36  ;;  %v2094_v36 = vld [vmem:[%s3555_s3] sm:$0x3] }
0x143a   :  { %2877 = vrsqrt.f32 %v1838_v37  ;;  %v2795_v37 = vld [vmem:[%s3552_s19 + $0x8] sm:$0xff]  }
0x1443   :  { %v2876_v38 = vpop.eup %2875 }
0x1444   :  { %v1841_v39 = vmul.f32 %v2876_v38, %v1825_v21  ;;  %v2796_v38 = vld [vmem:[%s3552_s19] sm:$0xff]  }
0x1446   :  { %v1849_v44 = vmul.f32 %v2376_v40, %v1841_v39 }
0x1447   :  { %v2878_v55 = vpop.eup %2877 }
0x1448   :  { %v1842_v42 = vmul.f32 %v2878_v55, %v1826_v23  ;;  %v1857_v49 = vadd.f32 %v2377_v45, %v1849_v44  ;;  %v2798_v44 = vld [vmem:[%s3556_s21] sm:$0xff]  }
0x144a   :  { %v1850_v47 = vmul.f32 %v2376_v40, %v1842_v42  ;;  %v2797_v42 = vld [vmem:[%s3556_s21 + $0x8] sm:$0xff]  }
0x144c   :  { %v1858_v50 = vadd.f32 %v2377_v45, %v1850_v47  ;;  %v2416_v45 = vld [vmem:[%s3557_s20] ss:$0 sm:$0xff] }
0x144e   :  { %v1864_v43 = vpack.c.bf16 %v1858_v50, %v1857_v49 }
0x1450   :  { %2673 = vmatmul.mubr.msk.bf16.vlgmr.msra.gmra.mxu0 %vm149_vm3, %v1864_v43 }
0x1451   :  { %2700 = vmatprep.mubr.msk.f32.mxu0 %vm2886_vm1, %v2885_v0 }
0x1510   :  { %v1922_v53 = vpop.f32.mrf.mxu0 }
0x1511   :  { %v1923_v56 = vadd.f32 %v2383_v48, %v1922_v53 }
0x1512   :  { %v2674_v54 = vpop.f32.mrf.mxu0 }
0x1513   :  { %v1929_v59 = vmax.f32 %v1923_v56, 0.0 }
0x1514   :  { %v1925_v57 = vpop.f32.mrf.mxu0 }
0x1515   :  { %v1926_v58 = vadd.f32 %v2383_v48, %v1925_v57 }
0x1516   :  { %v2675_v17 = vpop.f32.mrf.mxu0 }
0x1517   :  { %v1930_v60 = vmax.f32 %v1926_v58, 0.0 }
0x1519   :  { %v1948_v61 = vpack.c.bf16 %v1930_v60, %v1929_v59 }
0x151b   :  { %2693 = vmatmul.mubr.bf16.vlgmr.msra.gmra.mxu1 %v1948_v61 }
0x15db   :  { %v2031_v62 = vpop.f32.mrf.mxu1 }
0x15dc   :  { %v2038_v3 = vadd.f32 %v2031_v62, %v3421_v9 }
0x15dd   :  { %v2694_v4 = vpop.f32.mrf.mxu1 }
0x15de   :  { %v2048_v6 = vadd.f32 %v2412_v1, %v2038_v3 }
0x15df   :  { %v2034_v63 = vpop.f32.mrf.mxu1 }
0x15e0   :  { %v2039_v2 = vadd.f32 %v2034_v63, %v3426_v16  ;;  %v2052_v7 = vsel %vm149_vm3, %v2048_v6, 0.0 }
0x15e1   :  { %2053 = vadd.xlane.f32.xlu1 %v2052_v7  ;;  %v2695_v8 = vpop.f32.mrf.mxu1 }
0x15e2   :  { %v2049_v12 = vadd.f32 %v2412_v1, %v2039_v2 }
0x15e4   :  { %v2055_v13 = vsel %vm149_vm3, %v2049_v12, 0.0 }
0x15e5   :  { %2056 = vadd.xlane.f32.xlu0 %v2055_v13 }
0x166a   :  { %v2054_v14 = vpop.xlane.xlu1 %2053 }
0x166b   :  { %v2058_v15 = vmul.f32 0.03125, %v2054_v14 }
0x166d   :  { %v2060_v18 = vsub.f32 %v2048_v6, %v2058_v15 }
0x166e   :  { %v2057_v19 = vpop.xlane.xlu0 %2056 }
0x166f   :  { %v2059_v20 = vmul.f32 0.03125, %v2057_v19  ;;  %v2062_v21 = vmul.f32 %v2060_v18, %v2060_v18 }
0x1671   :  { %v2061_v9 = vsub.f32 %v2049_v12, %v2059_v20  ;;  %v2064_v41 = vsel %vm149_vm3, %v2062_v21, 0.0 }
0x1672   :  { %2065 = vadd.xlane.f32.xlu1 %v2064_v41 }
0x1673   :  { %v2063_v22 = vmul.f32 %v2061_v9, %v2061_v9 }
0x1675   :  { %v2067_v16 = vsel %vm149_vm3, %v2063_v22, 0.0 }
0x1676   :  { %2068 = vadd.xlane.f32.xlu0 %v2067_v16 }
0x16fb   :  { %v2066_v5 = vpop.xlane.xlu1 %2065 }
0x16fc   :  { %v2070_v23 = vmul.f32 0.03125, %v2066_v5 }
0x16fe   :  { %v2072_v24 = vadd.f32 1e-05, %v2070_v23 }
0x16ff   :  { %v2069_v25 = vpop.xlane.xlu0 %2068 }
0x1700   :  { %2879 = vrsqrt.f32 %v2072_v24  ;;  %v2071_v46 = vmul.f32 0.03125, %v2069_v25 }
0x1702   :  { %v2073_v26 = vadd.f32 1e-05, %v2071_v46 }
0x1704   :  { %2881 = vrsqrt.f32 %v2073_v26 }
0x170d   :  { %v2880_v10 = vpop.eup %2879 }
0x170e   :  { %v2076_v27 = vmul.f32 %v2880_v10, %v2060_v18 }
0x1710   :  { %v2084_v32 = vmul.f32 %v2413_v29, %v2076_v27 }
0x1711   :  { %v2882_v28 = vpop.eup %2881 }
0x1712   :  { %v2077_v30 = vmul.f32 %v2882_v28, %v2061_v9  ;;  %v2092_v35 = vadd.f32 %v2414_v33, %v2084_v32 }
0x1714   :  { %v2085_v31 = vmul.f32 %v2413_v29, %v2077_v30 }
0x1716   :  { %v2093_v34 = vadd.f32 %v2414_v33, %v2085_v31 }
0x1718   :  { %2697 = vmatpush3.msra.mxu0 %v2093_v34 }
0x1719   :  { %2698 = vmatprep.subr.mxu0 %v2885_v0 }
0x171a   :  { %2699 = vmatpush3.msra.mxu0 %v2092_v35 }
0x171b   :  { %2701 = vmatmul.mubr.msk.f32.vlgmr.msra.gmra.mxu0 %vm317_vm5, %v2094_v36  ;;  %2703 = vmatprep.subr.bf16.mxu0 %v2885_v0 }
0x171c   :  { %2704 = vmatpush3.bf16.msra.mxu0 %v2795_v37  ;;  %2707 = vmatprep.mubr.msk.bf16.mxu0 %vm2886_vm1, %v2885_v0 }
0x171d   :  { %2705 = vmatprep.subr.bf16.mxu0 %v2885_v0 }
0x1720   :  { %2706 = vmatpush3.bf16.msra.mxu0 %v2796_v38 }
0x1721   :  { %2711 = vmatprep.subr.bf16.mxu0 %v2885_v0 }
0x17db   :  { %v2164_v39 = vpop.f32.mrf.mxu0 }
0x17dc   :  { %v2172_v40 = vpack.c.bf16 %v2164_v39, %v2164_v39 }
0x17dd   :  { %v2702_v55 = vpop.f32.mrf.mxu0 }
0x17de   :  { %2708 = vmatmul.mubr.msk.bf16.vlgmr.msra.gmra.mxu0 %vm149_vm3, %v2172_v40 }
0x17df   :  { %2715 = vmatprep.mubr.msk.bf16.mxu0 %vm2886_vm1, %v2885_v0  ;;  %2712 = vmatpush3.bf16.msra.mxu0 %v2797_v42 }
0x17e0   :  { %2713 = vmatprep.subr.bf16.mxu0 %v2885_v0  ;;  %v2420_v0 = vld [vmem:[%s3558_s22] ss:$0 sm:$0xff] }
0x17e3   :  { %2714 = vmatpush3.bf16.msra.mxu0 %v2798_v44 }
0x189e   :  { %v2229_v47 = vpop.f32.mrf.mxu0 }
0x189f   :  { %v2230_v49 = vadd.f32 %v2416_v45, %v2229_v47 }
0x18a0   :  { %v2709_v50 = vpop.f32.mrf.mxu0 }
0x18a1   :  { %v2235_v43 = vmax.f32 %v2230_v49, 0.0 }
0x18a2   :  { %v2232_v51 = vpop.f32.mrf.mxu0 }
0x18a3   :  { %v2240_v52 = vpack.c.bf16 %v2235_v43, %v2235_v43 }
0x18a4   :  { %v2710_v11 = vpop.f32.mrf.mxu0 }
0x18a5   :  { %2716 = vmatmul.mubr.msk.bf16.vlgmr.msra.gmra.mxu0 %vm149_vm3, %v2240_v52 }
0x1965   :  { %v2297_v48 = vpop.f32.mrf.mxu0 }
0x1966   :  { %v2298_v53 = vadd.f32 %v2420_v0, %v2297_v48 }
0x1967   :  { %v2717_v54 = vpop.f32.mrf.mxu0 }
0x1968   :  { %2303 = vst [vmem:[%s3559_s23] sm:$0x3] %v2298_v53 }
0x1969   :  { %v2300_v56 = vpop.f32.mrf.mxu0 }
0x196b   :  { %v2718_v57 = vpop.f32.mrf.mxu0 }

</bundles_post_ra>
